<compile_context>
chip_gen: v5e
topology: v5e:2x2
jax: 0.10.0
libtpu: 0.0.40
codegen_flags: <defaults>
</compile_context>

<pallas_src>
import math

import jax
import jax.numpy as jnp
from jax.experimental import pallas as pl
from jax.experimental.pallas import tpu as pltpu

# Small hyper-parameters consistent with CaT.__init__
BATCH = 4
N_VAR = 8          # number of variables == len(var_types) == DAG nodes
INPUT_DIM = 1      # X is 2-D -> unsqueezed to (B, n_var, 1) by DynamicLinearEmbedding
EMBED_DIM = 32
NUM_HEADS = 2
HEAD_SIZE = 16
FF_N_EMBED = 64
N_LAYERS = 2
BN_EPS = 1e-5

M_TOK = BATCH * N_VAR                              # flattened (batch, variable) rows = 32
KV_COLS = 2 * NUM_HEADS * HEAD_SIZE * N_LAYERS     # fused K/V columns, all layers = 128
SLAB_W = 128                                       # single lane-dense parameter slab width
NEG_MASKED = -1.0e6                                # finite mask value (keep-mask zeroes it)

assert KV_COLS <= SLAB_W and FF_N_EMBED <= SLAB_W and M_TOK <= SLAB_W


def _align8(r):
    return (r + 7) // 8 * 8


# ---- single packed-parameter slab: row offsets shared by the packer and the kernel ----
# Global (layer-fused) regions.
R_KVW = 0                                  # (D, 128)  K/V weights, all layers & heads
R_KVB = R_KVW + EMBED_DIM                  # (1, 128)
R_Y0 = _align8(R_KVB + 1)                  # (M, D)    y0, batch-tiled
R_EMBW = R_Y0 + M_TOK                      # (M, D)    embedding weight, batch-tiled
R_EMBB = R_EMBW + M_TOK                    # (M, D)    embedding bias, batch-tiled
R_MASK = R_EMBB + M_TOK                    # (M, M)    block-diagonal DAG^T mask (0/1)
R_WLM = R_MASK + M_TOK                     # (D, 1)    lm_head weight (as a column)
R_BLM = R_WLM + EMBED_DIM                  # (1, 1)
R_BIN = _align8(R_BLM + 1)                 # (M, 1)    'bin' variable mask, batch-tiled
R_L0 = _align8(R_BIN + M_TOK)              # first per-layer block

# Per-layer block (offsets relative to the layer base); every load starts at lane 0.
O_WQ = 0                                   # (D, nh*H)  Q weights, scale folded
O_BQ = O_WQ + EMBED_DIM                    # (1, nh*H)
O_WP = _align8(O_BQ + 1)                   # (nh*H, D)  attention out-projection
O_BP = O_WP + NUM_HEADS * HEAD_SIZE        # (1, D)
O_W1 = _align8(O_BP + 1)                   # (D, F)     FF first linear
O_B1 = O_W1 + EMBED_DIM                    # (1, F)
O_W2 = _align8(O_B1 + 1)                   # (F, D)     FF second linear
O_B2 = O_W2 + FF_N_EMBED                   # (1, D)
O_BN1G = _align8(O_B2 + 1)                 # (n, D)     BN1 gamma, pre-broadcast across D
O_BN1B = O_BN1G + N_VAR                    # (n, D)     BN1 beta
O_BN2G = O_BN1B + N_VAR                    # (n, D)     BN2 gamma
O_BN2B = O_BN2G + N_VAR                    # (n, D)     BN2 beta
LAYER_ROWS = _align8(O_BN2B + N_VAR)

TOTAL_ROWS = R_L0 + N_LAYERS * LAYER_ROWS  # 688 rows x 128 lanes x 4 B ~= 344 KiB


def _bn(flat, g, b):
    """BatchNorm1d(num_features=n_var) with training-mode (batch) statistics.

    flat: (B*n, D) activations; g, b: (n, D) affine, pre-broadcast across D host-side.
    Single-pass stats: sum(z) and sum(z*z) are independent reductions (they pipeline),
    var = E[x^2] - mean^2.  The (B*n, D) <-> (B, n, D) reshape is layout-free (n == 8)."""
    z = flat.reshape(BATCH, N_VAR, EMBED_DIM)
    inv_cnt = 1.0 / (BATCH * EMBED_DIM)
    s1 = jnp.sum(z, axis=(0, 2), keepdims=True)
    s2 = jnp.sum(z * z, axis=(0, 2), keepdims=True)
    mu = s1 * inv_cnt
    var = s2 * inv_cnt - mu * mu
    zn = (z - mu) * jax.lax.rsqrt(var + BN_EPS) * g[None] + b[None]
    return zn.reshape(M_TOK, EMBED_DIM)


def _cat_kernel(x_ref, w_ref, out_ref):
    f32 = jnp.float32
    D, H, nh, F, L, M = EMBED_DIM, HEAD_SIZE, NUM_HEADS, FF_N_EMBED, N_LAYERS, M_TOK

    # Per-variable linear embedding: x arrives as a (B*n, 1) column and emb weights are
    # batch-tiled host-side, so this is a plain lane-broadcast FMA (no relayout).
    x_col = x_ref[...]                                            # (M, 1)
    xemb = (x_col * w_ref[R_EMBW:R_EMBW + M, :D]
            + w_ref[R_EMBB:R_EMBB + M, :D])                       # (M, D)
    y = w_ref[R_Y0:R_Y0 + M, :D]                                  # (M, D) batch-tiled y0
    allowed = w_ref[R_MASK:R_MASK + M, :M] > 0.5                  # block-diag DAG^T mask

    # K/V for every layer & head in ONE MXU matmul (xemb is loop-invariant -> hoisted).
    kv_all = (jnp.dot(xemb, w_ref[R_KVW:R_KVW + D, :], preferred_element_type=f32)
              + w_ref[R_KVB:R_KVB + 1, :])                        # (M, 128)

    for l in range(L):
        base = R_L0 + l * LAYER_ROWS

        # ---------------- multi-head attention ----------------
        # Q for both heads in one matmul; 1/sqrt(head_size) is folded into wq/bq.
        q_all = (jnp.dot(y, w_ref[base + O_WQ:base + O_WQ + D, :nh * H],
                         preferred_element_type=f32)
                 + w_ref[base + O_BQ:base + O_BQ + 1, :nh * H])
        kv_l = kv_all[:, l * 2 * nh * H:(l + 1) * 2 * nh * H]

        # Accumulate the output projection per head (no lane-offset concatenate).
        acc = w_ref[base + O_BP:base + O_BP + 1, :D]              # start from the bias
        for h in range(nh):
            Qh = q_all[:, h * H:(h + 1) * H]
            Kh = kv_l[:, h * H:(h + 1) * H]
            Vh = kv_l[:, nh * H + h * H:nh * H + (h + 1) * H]
            # Full (B*n, B*n) score matrix in a single MXU push; cross-batch entries are
            # masked below, so the per-batch softmax result is unchanged.
            S = jax.lax.dot_general(Qh, Kh, (((1,), (1,)), ((), ())),
                                    preferred_element_type=f32)
            # PyTorch masked_fill-on-zero quirk: masked when dagT == 0 OR score == 0.
            keep = jnp.logical_and(allowed, S != 0.0)
            keepf = keep.astype(f32)
            Sm = jnp.where(keep, S, NEG_MASKED)
            mrow = jnp.max(Sm, axis=-1, keepdims=True)            # finite even if all masked
            e = jnp.exp(Sm - mrow) * keepf                        # masked entries -> exact 0
            denom = jnp.sum(e, axis=-1, keepdims=True)
            inv = pl.reciprocal(denom + (denom == 0.0).astype(f32), approx=True)  # EUP
            P = e * inv                                           # all-masked rows -> zeros
            ctx = jnp.dot(P, Vh, preferred_element_type=f32)      # (M, H)
            acc = acc + jnp.dot(
                ctx, w_ref[base + O_WP + h * H:base + O_WP + (h + 1) * H, :D],
                preferred_element_type=f32)

        mha = acc + y
        mha = _bn(mha,
                  w_ref[base + O_BN1G:base + O_BN1G + N_VAR, :D],
                  w_ref[base + O_BN1B:base + O_BN1B + N_VAR, :D])

        # ---------------- feed-forward (Swish) ----------------
        h1 = (jnp.dot(mha, w_ref[base + O_W1:base + O_W1 + D, :F],
                      preferred_element_type=f32)
              + w_ref[base + O_B1:base + O_B1 + 1, :F])
        h1 = h1 * jax.nn.sigmoid(h1)                              # SwishAct / SiLU
        ff = (jnp.dot(h1, w_ref[base + O_W2:base + O_W2 + F, :D],
                      preferred_element_type=f32)
              + w_ref[base + O_B2:base + O_B2 + 1, :D])
        y = _bn(ff + mha,
                w_ref[base + O_BN2G:base + O_BN2G + N_VAR, :D],
                w_ref[base + O_BN2B:base + O_BN2B + N_VAR, :D])

    # lm_head as a single MXU matmul + per-variable sigmoid; (B*n, 1) column output.
    ylm = (jnp.dot(y, w_ref[R_WLM:R_WLM + D, :1], preferred_element_type=f32)
           + w_ref[R_BLM:R_BLM + 1, :1])
    bin_col = w_ref[R_BIN:R_BIN + M, :1]
    out_ref[...] = jnp.where(bin_col > 0.5, jax.nn.sigmoid(ylm), ylm)


def cat_forward(x, slab):
    """Run the fused CaT forward on the single packed parameter slab."""
    x_flat = x.reshape(M_TOK, 1)
    out = pl.pallas_call(
        _cat_kernel,
        out_shape=jax.ShapeDtypeStruct((M_TOK, 1), jnp.float32),
        in_specs=[pl.BlockSpec(memory_space=pltpu.MemorySpace.VMEM),
                  pl.BlockSpec(memory_space=pltpu.MemorySpace.VMEM)],
        out_specs=pl.BlockSpec(memory_space=pltpu.MemorySpace.VMEM),
        # Gridless on purpose: at B=4 the whole problem fits in a few vregs and a grid would
        # only add per-step overhead (v5e/v6e have one TensorCore).  For realistic batches,
        # add a leading batch grid axis with dimension_semantics=("parallel",) so both v7x
        # TensorCores get work.
    )(x_flat, slab)
    return out.reshape(x.shape)


# ----------------------------------------------------------------------------------------
# Host-side parameter construction / packing
# ----------------------------------------------------------------------------------------
def init_params(key):
    """Natural (per-module) parameter shapes, mirroring the PyTorch initialization."""
    D, H, F, n, nh, L = EMBED_DIM, HEAD_SIZE, FF_N_EMBED, N_VAR, NUM_HEADS, N_LAYERS
    ks = jax.random.split(key, 16)

    def xavier(k, shape, fan_in, fan_out):
        bound = math.sqrt(6.0 / (fan_in + fan_out))
        return jax.random.uniform(k, shape, jnp.float32, -bound, bound)

    # DAG: topologically sorted, edge i -> j for i < j; variable 0 has no parents,
    # exercising the all-masked (NaN-row-zeroing) attention path.
    dag = jnp.triu(jnp.ones((n, n), jnp.float32), k=1)

    return {
        "y0": jax.random.normal(ks[0], (n, D), jnp.float32),
        "dagT": dag.T,
        "emb_w": xavier(ks[1], (n, D), INPUT_DIM, D),
        "emb_b": jnp.full((n, D), 0.01, jnp.float32),
        "wq": xavier(ks[2], (L, nh, D, H), D, H),
        "bq": jnp.full((L, nh, 1, H), 0.01, jnp.float32),
        "wk": xavier(ks[3], (L, nh, D, H), D, H),
        "bk": jnp.full((L, nh, 1, H), 0.01, jnp.float32),
        "wv": xavier(ks[4], (L, nh, D, H), D, H),
        "bv": jnp.full((L, nh, 1, H), 0.01, jnp.float32),
        "wp": xavier(ks[5], (L, nh * H, D), nh * H, D),
        "bp": jnp.full((L, 1, D), 0.01, jnp.float32),
        "w1": xavier(ks[6], (L, D, F), D, F),
        "b1": jnp.full((L, 1, F), 0.01, jnp.float32),
        "w2": xavier(ks[7], (L, F, D), F, D),
        "b2": jnp.full((L, 1, D), 0.01, jnp.float32),
        "bn1_g": jnp.ones((L, n, 1), jnp.float32),
        "bn1_b": jnp.zeros((L, n, 1), jnp.float32),
        "bn2_g": jnp.ones((L, n, 1), jnp.float32),
        "bn2_b": jnp.zeros((L, n, 1), jnp.float32),
        "wlm": xavier(ks[8], (1, D), D, 1),
        "blm": jnp.full((1, 1), 0.01, jnp.float32),
        # var_types: alternate 'cont' / 'bin'
        "bin_mask": (jnp.arange(n)[None, :] % 2).astype(jnp.float32),
    }


def pack_params(p):
    """Pack all parameters into ONE lane-dense (TOTAL_ROWS, 128) f32 slab (host-side)."""
    D, H, n, nh, L, B = EMBED_DIM, HEAD_SIZE, N_VAR, NUM_HEADS, N_LAYERS, BATCH
    scale = 1.0 / math.sqrt(H)
    slab = jnp.zeros((TOTAL_ROWS, SLAB_W), jnp.float32)

    def put(s, row, block):
        h, w = block.shape
        return s.at[row:row + h, :w].set(block.astype(jnp.float32))

    # --- fused K/V projection (all layers/heads): columns [L0: Kh0 Kh1 Vh0 Vh1 | L1: ...]
    w_kv = jnp.concatenate([jnp.concatenate(
        [p["wk"][l, h] for h in range(nh)] + [p["wv"][l, h] for h in range(nh)], axis=1)
        for l in range(L)], axis=1)                               # (D, 128)
    b_kv = jnp.concatenate([jnp.concatenate(
        [p["bk"][l, h] for h in range(nh)] + [p["bv"][l, h] for h in range(nh)], axis=1)
        for l in range(L)], axis=1)                               # (1, 128)
    slab = put(slab, R_KVW, w_kv)
    slab = put(slab, R_KVB, b_kv)

    # --- batch-tiled y0 / embedding, block-diag mask, lm head, bin mask ---
    slab = put(slab, R_Y0, jnp.tile(p["y0"], (B, 1)))
    slab = put(slab, R_EMBW, jnp.tile(p["emb_w"], (B, 1)))
    slab = put(slab, R_EMBB, jnp.tile(p["emb_b"], (B, 1)))
    # DAG adjacency is 0/1 (nx.to_numpy_array of an unweighted DAG), so dagT>0 is equivalent
    # to the PyTorch dag_mod.T * S multiply-then-mask.
    allowed = jnp.kron(jnp.eye(B, dtype=jnp.float32),
                       (p["dagT"] > 0).astype(jnp.float32))       # (B*n, B*n)
    slab = put(slab, R_MASK, allowed)
    slab = put(slab, R_WLM, p["wlm"].T)                           # (D, 1)
    slab = put(slab, R_BLM, p["blm"])
    slab = put(slab, R_BIN, jnp.tile(p["bin_mask"].reshape(n, 1), (B, 1)))

    # --- per-layer blocks (row-stacked, every region starts at lane 0) ---
    for l in range(L):
        base = R_L0 + l * LAYER_ROWS
        wq = jnp.concatenate([p["wq"][l, h] for h in range(nh)], axis=1) * scale
        bq = jnp.concatenate([p["bq"][l, h] for h in range(nh)], axis=1) * scale
        slab = put(slab, base + O_WQ, wq)                         # (D, nh*H)
        slab = put(slab, base + O_BQ, bq)
        slab = put(slab, base + O_WP, p["wp"][l])                 # (nh*H, D)
        slab = put(slab, base + O_BP, p["bp"][l])
        slab = put(slab, base + O_W1, p["w1"][l])                 # (D, F)
        slab = put(slab, base + O_B1, p["b1"][l])
        slab = put(slab, base + O_W2, p["w2"][l])                 # (F, D)
        slab = put(slab, base + O_B2, p["b2"][l])
        # BN affines pre-broadcast across the D lanes (per-variable rows).
        slab = put(slab, base + O_BN1G, jnp.broadcast_to(p["bn1_g"][l], (n, D)))
        slab = put(slab, base + O_BN1B, jnp.broadcast_to(p["bn1_b"][l], (n, D)))
        slab = put(slab, base + O_BN2G, jnp.broadcast_to(p["bn2_g"][l], (n, D)))
        slab = put(slab, base + O_BN2B, jnp.broadcast_to(p["bn2_b"][l], (n, D)))
    return slab


# ----------------------------------------------------------------------------------------
# Pure-JAX reference (faithful transcription of the PyTorch graph) for the self-check.
# ----------------------------------------------------------------------------------------
def cat_reference(x, p):
    B, n = x.shape
    D = p["y0"].shape[-1]
    xemb = x[:, :, None] * p["emb_w"][None] + p["emb_b"][None]            # (B, n, D)
    y = jnp.broadcast_to(p["y0"][None], (B, n, D))
    dagT = p["dagT"]
    for l in range(N_LAYERS):
        heads = []
        for h in range(NUM_HEADS):
            Q = jnp.einsum("bnd,dh->bnh", y, p["wq"][l, h]) + p["bq"][l, h]
            K = jnp.einsum("bnd,dh->bnh", xemb, p["wk"][l, h]) + p["bk"][l, h]
            V = jnp.einsum("bnd,dh->bnh", xemb, p["wv"][l, h]) + p["bv"][l, h]
            S = jnp.einsum("bqh,bkh->bqk", Q, K) / (HEAD_SIZE ** 0.5)
            Sp = dagT[None] * S
            Sp = jnp.where(Sp == 0.0, -jnp.inf, Sp)                       # masked_fill
            finite_any = jnp.max(jnp.where(Sp != -jnp.inf, 1.0, 0.0),
                                 axis=-1, keepdims=True)
            m = jnp.where(finite_any > 0.0,
                          jnp.max(Sp, axis=-1, keepdims=True), 0.0)
            e = jnp.exp(Sp - m)
            s = jnp.sum(e, axis=-1, keepdims=True)
            P = jnp.where(finite_any > 0.0,
                          e / jnp.where(s == 0.0, 1.0, s), 0.0)           # NaN-row zeroing
            heads.append(jnp.einsum("bqk,bkh->bqh", P, V))
        mh = jnp.concatenate(heads, axis=-1)
        proj = jnp.einsum("bnk,kd->bnd", mh, p["wp"][l]) + p["bp"][l]
        mha_out = proj + y
        mu = jnp.mean(mha_out, axis=(0, 2), keepdims=True)
        var = jnp.mean((mha_out - mu) ** 2, axis=(0, 2), keepdims=True)
        mha_out = (mha_out - mu) * jax.lax.rsqrt(var + BN_EPS) * p["bn1_g"][l] + p["bn1_b"][l]
        hff = jnp.einsum("bnd,df->bnf", mha_out, p["w1"][l]) + p["b1"][l]
        hff = hff * jax.nn.sigmoid(hff)
        ff = jnp.einsum("bnf,fd->bnd", hff, p["w2"][l]) + p["b2"][l]
        ff_out = ff + mha_out
        mu2 = jnp.mean(ff_out, axis=(0, 2), keepdims=True)
        var2 = jnp.mean((ff_out - mu2) ** 2, axis=(0, 2), keepdims=True)
        y = (ff_out - mu2) * jax.lax.rsqrt(var2 + BN_EPS) * p["bn2_g"][l] + p["bn2_b"][l]
    ylm = jnp.sum(y * p["wlm"][None], axis=-1) + p["blm"]
    return jnp.where(p["bin_mask"] > 0.5, jax.nn.sigmoid(ylm), ylm)


# TODO(synk): shuffling path (host-side numpy permutation) and MixedLoss (targets branch)
# are training utilities outside the inference forward and are not implemented here.

if __name__ == "__main__":
    key = jax.random.PRNGKey(0)
    kp, kx = jax.random.split(key)
    params = init_params(kp)
    slab = pack_params(params)
    x = jax.random.normal(kx, (BATCH, N_VAR), jnp.float32)

    out = cat_forward(x, slab)
    jax.block_until_ready(out)

    ref = cat_reference(x, params)
    assert out.shape == (BATCH, N_VAR)
    assert bool(jnp.all(jnp.isfinite(out)))
    # Tolerance absorbs the in-kernel approximate EUP reciprocal in the softmax denominator,
    # the single-pass BN variance, and reassociation from the fused/flattened matmuls.
    assert bool(jnp.allclose(out, ref, atol=1e-2, rtol=1e-2)), \
        float(jnp.max(jnp.abs(out - ref)))
    print("KERNEL_OK")
</pallas_src>

<mosaic_0001>
module attributes {stable_mosaic.version = 11 : i64} {
  func.func @_cat_kernel(%arg0: memref<32x1xf32, #tpu.memory_space<vmem>>, %arg1: memref<688x128xf32, #tpu.memory_space<vmem>>, %arg2: memref<32x1xf32, #tpu.memory_space<vmem>>) attributes {dimension_semantics = [], scalar_prefetch = 0 : i64, scratch_operands = 0 : i64, tpu.core_type = #tpu.core_type<tc>} {
    %c0 = arith.constant 0 : index
    %c0_0 = arith.constant 0 : index
    %0 = vector.load %arg0[%c0, %c0_0] : memref<32x1xf32, #tpu.memory_space<vmem>>, vector<32x1xf32>
    %c72 = arith.constant 72 : index
    %c0_1 = arith.constant 0 : index
    %1 = vector.load %arg1[%c72, %c0_1] : memref<688x128xf32, #tpu.memory_space<vmem>>, vector<32x32xf32>
    %2 = vector.broadcast %0 : vector<32x1xf32> to vector<32x32xf32>
    %3 = arith.mulf %2, %1 : vector<32x32xf32>
    %c104 = arith.constant 104 : index
    %c0_2 = arith.constant 0 : index
    %4 = vector.load %arg1[%c104, %c0_2] : memref<688x128xf32, #tpu.memory_space<vmem>>, vector<32x32xf32>
    %5 = arith.addf %3, %4 : vector<32x32xf32>
    %c40 = arith.constant 40 : index
    %c0_3 = arith.constant 0 : index
    %6 = vector.load %arg1[%c40, %c0_3] : memref<688x128xf32, #tpu.memory_space<vmem>>, vector<32x32xf32>
    %c136 = arith.constant 136 : index
    %c0_4 = arith.constant 0 : index
    %7 = vector.load %arg1[%c136, %c0_4] : memref<688x128xf32, #tpu.memory_space<vmem>>, vector<32x32xf32>
    %cst = arith.constant 5.000000e-01 : f32
    %8 = vector.broadcast %cst : f32 to vector<32x32xf32>
    %9 = arith.cmpf ogt, %7, %8 : vector<32x32xf32>
    %c0_5 = arith.constant 0 : index
    %c0_6 = arith.constant 0 : index
    %10 = vector.load %arg1[%c0_5, %c0_6] : memref<688x128xf32, #tpu.memory_space<vmem>>, vector<32x128xf32>
    %cst_7 = arith.constant dense<0.000000e+00> : vector<32x128xf32>
    %11 = tpu.matmul %5, %10, %cst_7 {dimension_numbers = #tpu.dot_dimension_numbers<[1], [0], [0], [1], [0, 0, 1, 1], [], []>} : vector<32x32xf32>, vector<32x128xf32>, vector<32x128xf32> -> vector<32x128xf32>
    %c32 = arith.constant 32 : index
    %c0_8 = arith.constant 0 : index
    %12 = vector.load %arg1[%c32, %c0_8] : memref<688x128xf32, #tpu.memory_space<vmem>>, vector<1x128xf32>
    %13 = vector.broadcast %12 : vector<1x128xf32> to vector<32x128xf32>
    %14 = arith.addf %11, %13 : vector<32x128xf32>
    %c240 = arith.constant 240 : index
    %c0_9 = arith.constant 0 : index
    %15 = vector.load %arg1[%c240, %c0_9] : memref<688x128xf32, #tpu.memory_space<vmem>>, vector<32x32xf32>
    %cst_10 = arith.constant dense<0.000000e+00> : vector<32x32xf32>
    %16 = tpu.matmul %6, %15, %cst_10 {dimension_numbers = #tpu.dot_dimension_numbers<[1], [0], [0], [1], [0, 0, 1, 1], [], []>} : vector<32x32xf32>, vector<32x32xf32>, vector<32x32xf32> -> vector<32x32xf32>
    %c272 = arith.constant 272 : index
    %c0_11 = arith.constant 0 : index
    %17 = vector.load %arg1[%c272, %c0_11] : memref<688x128xf32, #tpu.memory_space<vmem>>, vector<1x32xf32>
    %18 = vector.broadcast %17 : vector<1x32xf32> to vector<32x32xf32>
    %19 = arith.addf %16, %18 : vector<32x32xf32>
    %20 = vector.extract_strided_slice %14 {offsets = [0, 0], sizes = [32, 64], strides = [1, 1]} : vector<32x128xf32> to vector<32x64xf32>
    %c312 = arith.constant 312 : index
    %c0_12 = arith.constant 0 : index
    %21 = vector.load %arg1[%c312, %c0_12] : memref<688x128xf32, #tpu.memory_space<vmem>>, vector<1x32xf32>
    %22 = vector.extract_strided_slice %19 {offsets = [0, 0], sizes = [32, 16], strides = [1, 1]} : vector<32x32xf32> to vector<32x16xf32>
    %23 = vector.extract_strided_slice %20 {offsets = [0, 0], sizes = [32, 16], strides = [1, 1]} : vector<32x64xf32> to vector<32x16xf32>
    %24 = vector.extract_strided_slice %20 {offsets = [0, 32], sizes = [32, 16], strides = [1, 1]} : vector<32x64xf32> to vector<32x16xf32>
    %cst_13 = arith.constant dense<0.000000e+00> : vector<32x32xf32>
    %25 = tpu.matmul %22, %23, %cst_13 {dimension_numbers = #tpu.dot_dimension_numbers<[1], [1], [0], [0], [0, 0, 1, 0], [], []>} : vector<32x16xf32>, vector<32x16xf32>, vector<32x32xf32> -> vector<32x32xf32>
    %cst_14 = arith.constant 0.000000e+00 : f32
    %26 = vector.broadcast %cst_14 : f32 to vector<32x32xf32>
    %27 = arith.cmpf one, %25, %26 : vector<32x32xf32>
    %28 = arith.andi %9, %27 : vector<32x32xi1>
    %29 = arith.extui %28 : vector<32x32xi1> to vector<32x32xi32>
    %30 = arith.sitofp %29 : vector<32x32xi32> to vector<32x32xf32>
    %cst_15 = arith.constant -1.000000e+06 : f32
    %31 = vector.broadcast %cst_15 : f32 to vector<32x32xf32>
    %32 = arith.select %28, %25, %31 : vector<32x32xi1>, vector<32x32xf32>
    %cst_16 = arith.constant dense<0xFF800000> : vector<32xf32>
    %33 = vector.multi_reduction <maximumf>, %32, %cst_16 [1] : vector<32x32xf32> to vector<32xf32>
    %34 = vector.shape_cast %33 : vector<32xf32> to vector<32x1xf32>
    %35 = vector.broadcast %34 : vector<32x1xf32> to vector<32x32xf32>
    %36 = arith.subf %32, %35 : vector<32x32xf32>
    %37 = math.exp %36 : vector<32x32xf32>
    %38 = arith.mulf %37, %30 : vector<32x32xf32>
    %cst_17 = arith.constant dense<0.000000e+00> : vector<32xf32>
    %39 = vector.multi_reduction <add>, %38, %cst_17 [1] : vector<32x32xf32> to vector<32xf32>
    %40 = vector.shape_cast %39 : vector<32xf32> to vector<32x1xf32>
    %cst_18 = arith.constant 0.000000e+00 : f32
    %41 = vector.broadcast %cst_18 : f32 to vector<32x1xf32>
    %42 = arith.cmpf oeq, %40, %41 : vector<32x1xf32>
    %43 = arith.extui %42 : vector<32x1xi1> to vector<32x1xi32>
    %44 = arith.sitofp %43 : vector<32x1xi32> to vector<32x1xf32>
    %45 = arith.addf %40, %44 : vector<32x1xf32>
    %46 = tpu.reciprocal %45 {approx = true} : vector<32x1xf32> -> vector<32x1xf32>
    %47 = vector.broadcast %46 : vector<32x1xf32> to vector<32x32xf32>
    %48 = arith.mulf %38, %47 : vector<32x32xf32>
    %cst_19 = arith.constant dense<0.000000e+00> : vector<32x16xf32>
    %49 = tpu.matmul %48, %24, %cst_19 {dimension_numbers = #tpu.dot_dimension_numbers<[1], [0], [0], [1], [0, 0, 1, 1], [], []>} : vector<32x32xf32>, vector<32x16xf32>, vector<32x16xf32> -> vector<32x16xf32>
    %c280 = arith.constant 280 : index
    %c0_20 = arith.constant 0 : index
    %50 = vector.load %arg1[%c280, %c0_20] : memref<688x128xf32, #tpu.memory_space<vmem>>, vector<16x32xf32>
    %cst_21 = arith.constant dense<0.000000e+00> : vector<32x32xf32>
    %51 = tpu.matmul %49, %50, %cst_21 {dimension_numbers = #tpu.dot_dimension_numbers<[1], [0], [0], [1], [0, 0, 1, 1], [], []>} : vector<32x16xf32>, vector<16x32xf32>, vector<32x32xf32> -> vector<32x32xf32>
    %52 = vector.broadcast %21 : vector<1x32xf32> to vector<32x32xf32>
    %53 = arith.addf %52, %51 : vector<32x32xf32>
    %54 = vector.extract_strided_slice %19 {offsets = [0, 16], sizes = [32, 16], strides = [1, 1]} : vector<32x32xf32> to vector<32x16xf32>
    %55 = vector.extract_strided_slice %20 {offsets = [0, 16], sizes = [32, 16], strides = [1, 1]} : vector<32x64xf32> to vector<32x16xf32>
    %56 = vector.extract_strided_slice %20 {offsets = [0, 48], sizes = [32, 16], strides = [1, 1]} : vector<32x64xf32> to vector<32x16xf32>
    %cst_22 = arith.constant dense<0.000000e+00> : vector<32x32xf32>
    %57 = tpu.matmul %54, %55, %cst_22 {dimension_numbers = #tpu.dot_dimension_numbers<[1], [1], [0], [0], [0, 0, 1, 0], [], []>} : vector<32x16xf32>, vector<32x16xf32>, vector<32x32xf32> -> vector<32x32xf32>
    %cst_23 = arith.constant 0.000000e+00 : f32
    %58 = vector.broadcast %cst_23 : f32 to vector<32x32xf32>
    %59 = arith.cmpf one, %57, %58 : vector<32x32xf32>
    %60 = arith.andi %9, %59 : vector<32x32xi1>
    %61 = arith.extui %60 : vector<32x32xi1> to vector<32x32xi32>
    %62 = arith.sitofp %61 : vector<32x32xi32> to vector<32x32xf32>
    %cst_24 = arith.constant -1.000000e+06 : f32
    %63 = vector.broadcast %cst_24 : f32 to vector<32x32xf32>
    %64 = arith.select %60, %57, %63 : vector<32x32xi1>, vector<32x32xf32>
    %cst_25 = arith.constant dense<0xFF800000> : vector<32xf32>
    %65 = vector.multi_reduction <maximumf>, %64, %cst_25 [1] : vector<32x32xf32> to vector<32xf32>
    %66 = vector.shape_cast %65 : vector<32xf32> to vector<32x1xf32>
    %67 = vector.broadcast %66 : vector<32x1xf32> to vector<32x32xf32>
    %68 = arith.subf %64, %67 : vector<32x32xf32>
    %69 = math.exp %68 : vector<32x32xf32>
    %70 = arith.mulf %69, %62 : vector<32x32xf32>
    %cst_26 = arith.constant dense<0.000000e+00> : vector<32xf32>
    %71 = vector.multi_reduction <add>, %70, %cst_26 [1] : vector<32x32xf32> to vector<32xf32>
    %72 = vector.shape_cast %71 : vector<32xf32> to vector<32x1xf32>
    %cst_27 = arith.constant 0.000000e+00 : f32
    %73 = vector.broadcast %cst_27 : f32 to vector<32x1xf32>
    %74 = arith.cmpf oeq, %72, %73 : vector<32x1xf32>
    %75 = arith.extui %74 : vector<32x1xi1> to vector<32x1xi32>
    %76 = arith.sitofp %75 : vector<32x1xi32> to vector<32x1xf32>
    %77 = arith.addf %72, %76 : vector<32x1xf32>
    %78 = tpu.reciprocal %77 {approx = true} : vector<32x1xf32> -> vector<32x1xf32>
    %79 = vector.broadcast %78 : vector<32x1xf32> to vector<32x32xf32>
    %80 = arith.mulf %70, %79 : vector<32x32xf32>
    %cst_28 = arith.constant dense<0.000000e+00> : vector<32x16xf32>
    %81 = tpu.matmul %80, %56, %cst_28 {dimension_numbers = #tpu.dot_dimension_numbers<[1], [0], [0], [1], [0, 0, 1, 1], [], []>} : vector<32x32xf32>, vector<32x16xf32>, vector<32x16xf32> -> vector<32x16xf32>
    %c296 = arith.constant 296 : index
    %c0_29 = arith.constant 0 : index
    %82 = vector.load %arg1[%c296, %c0_29] : memref<688x128xf32, #tpu.memory_space<vmem>>, vector<16x32xf32>
    %cst_30 = arith.constant dense<0.000000e+00> : vector<32x32xf32>
    %83 = tpu.matmul %81, %82, %cst_30 {dimension_numbers = #tpu.dot_dimension_numbers<[1], [0], [0], [1], [0, 0, 1, 1], [], []>} : vector<32x16xf32>, vector<16x32xf32>, vector<32x32xf32> -> vector<32x32xf32>
    %84 = arith.addf %53, %83 : vector<32x32xf32>
    %85 = arith.addf %84, %6 : vector<32x32xf32>
    %c432 = arith.constant 432 : index
    %c0_31 = arith.constant 0 : index
    %86 = vector.load %arg1[%c432, %c0_31] : memref<688x128xf32, #tpu.memory_space<vmem>>, vector<8x32xf32>
    %c440 = arith.constant 440 : index
    %c0_32 = arith.constant 0 : index
    %87 = vector.load %arg1[%c440, %c0_32] : memref<688x128xf32, #tpu.memory_space<vmem>>, vector<8x32xf32>
    %88 = vector.shape_cast %85 : vector<32x32xf32> to vector<4x8x32xf32>
    %cst_33 = arith.constant dense<0.000000e+00> : vector<8xf32>
    %89 = vector.multi_reduction <add>, %88, %cst_33 [0, 2] : vector<4x8x32xf32> to vector<8xf32>
    %90 = vector.shape_cast %89 : vector<8xf32> to vector<1x8x1xf32>
    %91 = arith.mulf %88, %88 : vector<4x8x32xf32>
    %cst_34 = arith.constant dense<0.000000e+00> : vector<8xf32>
    %92 = vector.multi_reduction <add>, %91, %cst_34 [0, 2] : vector<4x8x32xf32> to vector<8xf32>
    %93 = vector.shape_cast %92 : vector<8xf32> to vector<1x8x1xf32>
    %cst_35 = arith.constant 7.812500e-03 : f32
    %94 = vector.broadcast %cst_35 : f32 to vector<1x8x1xf32>
    %95 = arith.mulf %90, %94 : vector<1x8x1xf32>
    %cst_36 = arith.constant 7.812500e-03 : f32
    %96 = vector.broadcast %cst_36 : f32 to vector<1x8x1xf32>
    %97 = arith.mulf %93, %96 : vector<1x8x1xf32>
    %98 = arith.mulf %95, %95 : vector<1x8x1xf32>
    %99 = arith.subf %97, %98 : vector<1x8x1xf32>
    %100 = vector.broadcast %95 : vector<1x8x1xf32> to vector<4x8x32xf32>
    %101 = arith.subf %88, %100 : vector<4x8x32xf32>
    %cst_37 = arith.constant 9.99999974E-6 : f32
    %102 = vector.broadcast %cst_37 : f32 to vector<1x8x1xf32>
    %103 = arith.addf %99, %102 : vector<1x8x1xf32>
    %104 = math.rsqrt %103 : vector<1x8x1xf32>
    %105 = vector.broadcast %104 : vector<1x8x1xf32> to vector<4x8x32xf32>
    %106 = arith.mulf %101, %105 : vector<4x8x32xf32>
    %107 = vector.shape_cast %86 : vector<8x32xf32> to vector<1x8x32xf32>
    %108 = vector.broadcast %107 : vector<1x8x32xf32> to vector<4x8x32xf32>
    %109 = arith.mulf %106, %108 : vector<4x8x32xf32>
    %110 = vector.shape_cast %87 : vector<8x32xf32> to vector<1x8x32xf32>
    %111 = vector.broadcast %110 : vector<1x8x32xf32> to vector<4x8x32xf32>
    %112 = arith.addf %109, %111 : vector<4x8x32xf32>
    %113 = vector.shape_cast %112 : vector<4x8x32xf32> to vector<32x32xf32>
    %c320 = arith.constant 320 : index
    %c0_38 = arith.constant 0 : index
    %114 = vector.load %arg1[%c320, %c0_38] : memref<688x128xf32, #tpu.memory_space<vmem>>, vector<32x64xf32>
    %cst_39 = arith.constant dense<0.000000e+00> : vector<32x64xf32>
    %115 = tpu.matmul %113, %114, %cst_39 {dimension_numbers = #tpu.dot_dimension_numbers<[1], [0], [0], [1], [0, 0, 1, 1], [], []>} : vector<32x32xf32>, vector<32x64xf32>, vector<32x64xf32> -> vector<32x64xf32>
    %c352 = arith.constant 352 : index
    %c0_40 = arith.constant 0 : index
    %116 = vector.load %arg1[%c352, %c0_40] : memref<688x128xf32, #tpu.memory_space<vmem>>, vector<1x64xf32>
    %117 = vector.broadcast %116 : vector<1x64xf32> to vector<32x64xf32>
    %118 = arith.addf %115, %117 : vector<32x64xf32>
    %119 = arith.negf %118 : vector<32x64xf32>
    %120 = math.exp %119 : vector<32x64xf32>
    %cst_41 = arith.constant 1.000000e+00 : f32
    %121 = vector.broadcast %cst_41 : f32 to vector<32x64xf32>
    %122 = arith.addf %121, %120 : vector<32x64xf32>
    %123 = arith.divf %121, %122 : vector<32x64xf32>
    %124 = arith.mulf %118, %123 : vector<32x64xf32>
    %c360 = arith.constant 360 : index
    %c0_42 = arith.constant 0 : index
    %125 = vector.load %arg1[%c360, %c0_42] : memref<688x128xf32, #tpu.memory_space<vmem>>, vector<64x32xf32>
    %cst_43 = arith.constant dense<0.000000e+00> : vector<32x32xf32>
    %126 = tpu.matmul %124, %125, %cst_43 {dimension_numbers = #tpu.dot_dimension_numbers<[1], [0], [0], [1], [0, 0, 1, 1], [], []>} : vector<32x64xf32>, vector<64x32xf32>, vector<32x32xf32> -> vector<32x32xf32>
    %c424 = arith.constant 424 : index
    %c0_44 = arith.constant 0 : index
    %127 = vector.load %arg1[%c424, %c0_44] : memref<688x128xf32, #tpu.memory_space<vmem>>, vector<1x32xf32>
    %128 = vector.broadcast %127 : vector<1x32xf32> to vector<32x32xf32>
    %129 = arith.addf %126, %128 : vector<32x32xf32>
    %130 = arith.addf %129, %113 : vector<32x32xf32>
    %c448 = arith.constant 448 : index
    %c0_45 = arith.constant 0 : index
    %131 = vector.load %arg1[%c448, %c0_45] : memref<688x128xf32, #tpu.memory_space<vmem>>, vector<8x32xf32>
    %c456 = arith.constant 456 : index
    %c0_46 = arith.constant 0 : index
    %132 = vector.load %arg1[%c456, %c0_46] : memref<688x128xf32, #tpu.memory_space<vmem>>, vector<8x32xf32>
    %133 = vector.shape_cast %130 : vector<32x32xf32> to vector<4x8x32xf32>
    %cst_47 = arith.constant dense<0.000000e+00> : vector<8xf32>
    %134 = vector.multi_reduction <add>, %133, %cst_47 [0, 2] : vector<4x8x32xf32> to vector<8xf32>
    %135 = vector.shape_cast %134 : vector<8xf32> to vector<1x8x1xf32>
    %136 = arith.mulf %133, %133 : vector<4x8x32xf32>
    %cst_48 = arith.constant dense<0.000000e+00> : vector<8xf32>
    %137 = vector.multi_reduction <add>, %136, %cst_48 [0, 2] : vector<4x8x32xf32> to vector<8xf32>
    %138 = vector.shape_cast %137 : vector<8xf32> to vector<1x8x1xf32>
    %cst_49 = arith.constant 7.812500e-03 : f32
    %139 = vector.broadcast %cst_49 : f32 to vector<1x8x1xf32>
    %140 = arith.mulf %135, %139 : vector<1x8x1xf32>
    %cst_50 = arith.constant 7.812500e-03 : f32
    %141 = vector.broadcast %cst_50 : f32 to vector<1x8x1xf32>
    %142 = arith.mulf %138, %141 : vector<1x8x1xf32>
    %143 = arith.mulf %140, %140 : vector<1x8x1xf32>
    %144 = arith.subf %142, %143 : vector<1x8x1xf32>
    %145 = vector.broadcast %140 : vector<1x8x1xf32> to vector<4x8x32xf32>
    %146 = arith.subf %133, %145 : vector<4x8x32xf32>
    %cst_51 = arith.constant 9.99999974E-6 : f32
    %147 = vector.broadcast %cst_51 : f32 to vector<1x8x1xf32>
    %148 = arith.addf %144, %147 : vector<1x8x1xf32>
    %149 = math.rsqrt %148 : vector<1x8x1xf32>
    %150 = vector.broadcast %149 : vector<1x8x1xf32> to vector<4x8x32xf32>
    %151 = arith.mulf %146, %150 : vector<4x8x32xf32>
    %152 = vector.shape_cast %131 : vector<8x32xf32> to vector<1x8x32xf32>
    %153 = vector.broadcast %152 : vector<1x8x32xf32> to vector<4x8x32xf32>
    %154 = arith.mulf %151, %153 : vector<4x8x32xf32>
    %155 = vector.shape_cast %132 : vector<8x32xf32> to vector<1x8x32xf32>
    %156 = vector.broadcast %155 : vector<1x8x32xf32> to vector<4x8x32xf32>
    %157 = arith.addf %154, %156 : vector<4x8x32xf32>
    %158 = vector.shape_cast %157 : vector<4x8x32xf32> to vector<32x32xf32>
    %c464 = arith.constant 464 : index
    %c0_52 = arith.constant 0 : index
    %159 = vector.load %arg1[%c464, %c0_52] : memref<688x128xf32, #tpu.memory_space<vmem>>, vector<32x32xf32>
    %cst_53 = arith.constant dense<0.000000e+00> : vector<32x32xf32>
    %160 = tpu.matmul %158, %159, %cst_53 {dimension_numbers = #tpu.dot_dimension_numbers<[1], [0], [0], [1], [0, 0, 1, 1], [], []>} : vector<32x32xf32>, vector<32x32xf32>, vector<32x32xf32> -> vector<32x32xf32>
    %c496 = arith.constant 496 : index
    %c0_54 = arith.constant 0 : index
    %161 = vector.load %arg1[%c496, %c0_54] : memref<688x128xf32, #tpu.memory_space<vmem>>, vector<1x32xf32>
    %162 = vector.broadcast %161 : vector<1x32xf32> to vector<32x32xf32>
    %163 = arith.addf %160, %162 : vector<32x32xf32>
    %164 = vector.extract_strided_slice %14 {offsets = [0, 64], sizes = [32, 64], strides = [1, 1]} : vector<32x128xf32> to vector<32x64xf32>
    %c536 = arith.constant 536 : index
    %c0_55 = arith.constant 0 : index
    %165 = vector.load %arg1[%c536, %c0_55] : memref<688x128xf32, #tpu.memory_space<vmem>>, vector<1x32xf32>
    %166 = vector.extract_strided_slice %163 {offsets = [0, 0], sizes = [32, 16], strides = [1, 1]} : vector<32x32xf32> to vector<32x16xf32>
    %167 = vector.extract_strided_slice %164 {offsets = [0, 0], sizes = [32, 16], strides = [1, 1]} : vector<32x64xf32> to vector<32x16xf32>
    %168 = vector.extract_strided_slice %164 {offsets = [0, 32], sizes = [32, 16], strides = [1, 1]} : vector<32x64xf32> to vector<32x16xf32>
    %cst_56 = arith.constant dense<0.000000e+00> : vector<32x32xf32>
    %169 = tpu.matmul %166, %167, %cst_56 {dimension_numbers = #tpu.dot_dimension_numbers<[1], [1], [0], [0], [0, 0, 1, 0], [], []>} : vector<32x16xf32>, vector<32x16xf32>, vector<32x32xf32> -> vector<32x32xf32>
    %cst_57 = arith.constant 0.000000e+00 : f32
    %170 = vector.broadcast %cst_57 : f32 to vector<32x32xf32>
    %171 = arith.cmpf one, %169, %170 : vector<32x32xf32>
    %172 = arith.andi %9, %171 : vector<32x32xi1>
    %173 = arith.extui %172 : vector<32x32xi1> to vector<32x32xi32>
    %174 = arith.sitofp %173 : vector<32x32xi32> to vector<32x32xf32>
    %cst_58 = arith.constant -1.000000e+06 : f32
    %175 = vector.broadcast %cst_58 : f32 to vector<32x32xf32>
    %176 = arith.select %172, %169, %175 : vector<32x32xi1>, vector<32x32xf32>
    %cst_59 = arith.constant dense<0xFF800000> : vector<32xf32>
    %177 = vector.multi_reduction <maximumf>, %176, %cst_59 [1] : vector<32x32xf32> to vector<32xf32>
    %178 = vector.shape_cast %177 : vector<32xf32> to vector<32x1xf32>
    %179 = vector.broadcast %178 : vector<32x1xf32> to vector<32x32xf32>
    %180 = arith.subf %176, %179 : vector<32x32xf32>
    %181 = math.exp %180 : vector<32x32xf32>
    %182 = arith.mulf %181, %174 : vector<32x32xf32>
    %cst_60 = arith.constant dense<0.000000e+00> : vector<32xf32>
    %183 = vector.multi_reduction <add>, %182, %cst_60 [1] : vector<32x32xf32> to vector<32xf32>
    %184 = vector.shape_cast %183 : vector<32xf32> to vector<32x1xf32>
    %cst_61 = arith.constant 0.000000e+00 : f32
    %185 = vector.broadcast %cst_61 : f32 to vector<32x1xf32>
    %186 = arith.cmpf oeq, %184, %185 : vector<32x1xf32>
    %187 = arith.extui %186 : vector<32x1xi1> to vector<32x1xi32>
    %188 = arith.sitofp %187 : vector<32x1xi32> to vector<32x1xf32>
    %189 = arith.addf %184, %188 : vector<32x1xf32>
    %190 = tpu.reciprocal %189 {approx = true} : vector<32x1xf32> -> vector<32x1xf32>
    %191 = vector.broadcast %190 : vector<32x1xf32> to vector<32x32xf32>
    %192 = arith.mulf %182, %191 : vector<32x32xf32>
    %cst_62 = arith.constant dense<0.000000e+00> : vector<32x16xf32>
    %193 = tpu.matmul %192, %168, %cst_62 {dimension_numbers = #tpu.dot_dimension_numbers<[1], [0], [0], [1], [0, 0, 1, 1], [], []>} : vector<32x32xf32>, vector<32x16xf32>, vector<32x16xf32> -> vector<32x16xf32>
    %c504 = arith.constant 504 : index
    %c0_63 = arith.constant 0 : index
    %194 = vector.load %arg1[%c504, %c0_63] : memref<688x128xf32, #tpu.memory_space<vmem>>, vector<16x32xf32>
    %cst_64 = arith.constant dense<0.000000e+00> : vector<32x32xf32>
    %195 = tpu.matmul %193, %194, %cst_64 {dimension_numbers = #tpu.dot_dimension_numbers<[1], [0], [0], [1], [0, 0, 1, 1], [], []>} : vector<32x16xf32>, vector<16x32xf32>, vector<32x32xf32> -> vector<32x32xf32>
    %196 = vector.broadcast %165 : vector<1x32xf32> to vector<32x32xf32>
    %197 = arith.addf %196, %195 : vector<32x32xf32>
    %198 = vector.extract_strided_slice %163 {offsets = [0, 16], sizes = [32, 16], strides = [1, 1]} : vector<32x32xf32> to vector<32x16xf32>
    %199 = vector.extract_strided_slice %164 {offsets = [0, 16], sizes = [32, 16], strides = [1, 1]} : vector<32x64xf32> to vector<32x16xf32>
    %200 = vector.extract_strided_slice %164 {offsets = [0, 48], sizes = [32, 16], strides = [1, 1]} : vector<32x64xf32> to vector<32x16xf32>
    %cst_65 = arith.constant dense<0.000000e+00> : vector<32x32xf32>
    %201 = tpu.matmul %198, %199, %cst_65 {dimension_numbers = #tpu.dot_dimension_numbers<[1], [1], [0], [0], [0, 0, 1, 0], [], []>} : vector<32x16xf32>, vector<32x16xf32>, vector<32x32xf32> -> vector<32x32xf32>
    %cst_66 = arith.constant 0.000000e+00 : f32
    %202 = vector.broadcast %cst_66 : f32 to vector<32x32xf32>
    %203 = arith.cmpf one, %201, %202 : vector<32x32xf32>
    %204 = arith.andi %9, %203 : vector<32x32xi1>
    %205 = arith.extui %204 : vector<32x32xi1> to vector<32x32xi32>
    %206 = arith.sitofp %205 : vector<32x32xi32> to vector<32x32xf32>
    %cst_67 = arith.constant -1.000000e+06 : f32
    %207 = vector.broadcast %cst_67 : f32 to vector<32x32xf32>
    %208 = arith.select %204, %201, %207 : vector<32x32xi1>, vector<32x32xf32>
    %cst_68 = arith.constant dense<0xFF800000> : vector<32xf32>
    %209 = vector.multi_reduction <maximumf>, %208, %cst_68 [1] : vector<32x32xf32> to vector<32xf32>
    %210 = vector.shape_cast %209 : vector<32xf32> to vector<32x1xf32>
    %211 = vector.broadcast %210 : vector<32x1xf32> to vector<32x32xf32>
    %212 = arith.subf %208, %211 : vector<32x32xf32>
    %213 = math.exp %212 : vector<32x32xf32>
    %214 = arith.mulf %213, %206 : vector<32x32xf32>
    %cst_69 = arith.constant dense<0.000000e+00> : vector<32xf32>
    %215 = vector.multi_reduction <add>, %214, %cst_69 [1] : vector<32x32xf32> to vector<32xf32>
    %216 = vector.shape_cast %215 : vector<32xf32> to vector<32x1xf32>
    %cst_70 = arith.constant 0.000000e+00 : f32
    %217 = vector.broadcast %cst_70 : f32 to vector<32x1xf32>
    %218 = arith.cmpf oeq, %216, %217 : vector<32x1xf32>
    %219 = arith.extui %218 : vector<32x1xi1> to vector<32x1xi32>
    %220 = arith.sitofp %219 : vector<32x1xi32> to vector<32x1xf32>
    %221 = arith.addf %216, %220 : vector<32x1xf32>
    %222 = tpu.reciprocal %221 {approx = true} : vector<32x1xf32> -> vector<32x1xf32>
    %223 = vector.broadcast %222 : vector<32x1xf32> to vector<32x32xf32>
    %224 = arith.mulf %214, %223 : vector<32x32xf32>
    %cst_71 = arith.constant dense<0.000000e+00> : vector<32x16xf32>
    %225 = tpu.matmul %224, %200, %cst_71 {dimension_numbers = #tpu.dot_dimension_numbers<[1], [0], [0], [1], [0, 0, 1, 1], [], []>} : vector<32x32xf32>, vector<32x16xf32>, vector<32x16xf32> -> vector<32x16xf32>
    %c520 = arith.constant 520 : index
    %c0_72 = arith.constant 0 : index
    %226 = vector.load %arg1[%c520, %c0_72] : memref<688x128xf32, #tpu.memory_space<vmem>>, vector<16x32xf32>
    %cst_73 = arith.constant dense<0.000000e+00> : vector<32x32xf32>
    %227 = tpu.matmul %225, %226, %cst_73 {dimension_numbers = #tpu.dot_dimension_numbers<[1], [0], [0], [1], [0, 0, 1, 1], [], []>} : vector<32x16xf32>, vector<16x32xf32>, vector<32x32xf32> -> vector<32x32xf32>
    %228 = arith.addf %197, %227 : vector<32x32xf32>
    %229 = arith.addf %228, %158 : vector<32x32xf32>
    %c656 = arith.constant 656 : index
    %c0_74 = arith.constant 0 : index
    %230 = vector.load %arg1[%c656, %c0_74] : memref<688x128xf32, #tpu.memory_space<vmem>>, vector<8x32xf32>
    %c664 = arith.constant 664 : index
    %c0_75 = arith.constant 0 : index
    %231 = vector.load %arg1[%c664, %c0_75] : memref<688x128xf32, #tpu.memory_space<vmem>>, vector<8x32xf32>
    %232 = vector.shape_cast %229 : vector<32x32xf32> to vector<4x8x32xf32>
    %cst_76 = arith.constant dense<0.000000e+00> : vector<8xf32>
    %233 = vector.multi_reduction <add>, %232, %cst_76 [0, 2] : vector<4x8x32xf32> to vector<8xf32>
    %234 = vector.shape_cast %233 : vector<8xf32> to vector<1x8x1xf32>
    %235 = arith.mulf %232, %232 : vector<4x8x32xf32>
    %cst_77 = arith.constant dense<0.000000e+00> : vector<8xf32>
    %236 = vector.multi_reduction <add>, %235, %cst_77 [0, 2] : vector<4x8x32xf32> to vector<8xf32>
    %237 = vector.shape_cast %236 : vector<8xf32> to vector<1x8x1xf32>
    %cst_78 = arith.constant 7.812500e-03 : f32
    %238 = vector.broadcast %cst_78 : f32 to vector<1x8x1xf32>
    %239 = arith.mulf %234, %238 : vector<1x8x1xf32>
    %cst_79 = arith.constant 7.812500e-03 : f32
    %240 = vector.broadcast %cst_79 : f32 to vector<1x8x1xf32>
    %241 = arith.mulf %237, %240 : vector<1x8x1xf32>
    %242 = arith.mulf %239, %239 : vector<1x8x1xf32>
    %243 = arith.subf %241, %242 : vector<1x8x1xf32>
    %244 = vector.broadcast %239 : vector<1x8x1xf32> to vector<4x8x32xf32>
    %245 = arith.subf %232, %244 : vector<4x8x32xf32>
    %cst_80 = arith.constant 9.99999974E-6 : f32
    %246 = vector.broadcast %cst_80 : f32 to vector<1x8x1xf32>
    %247 = arith.addf %243, %246 : vector<1x8x1xf32>
    %248 = math.rsqrt %247 : vector<1x8x1xf32>
    %249 = vector.broadcast %248 : vector<1x8x1xf32> to vector<4x8x32xf32>
    %250 = arith.mulf %245, %249 : vector<4x8x32xf32>
    %251 = vector.shape_cast %230 : vector<8x32xf32> to vector<1x8x32xf32>
    %252 = vector.broadcast %251 : vector<1x8x32xf32> to vector<4x8x32xf32>
    %253 = arith.mulf %250, %252 : vector<4x8x32xf32>
    %254 = vector.shape_cast %231 : vector<8x32xf32> to vector<1x8x32xf32>
    %255 = vector.broadcast %254 : vector<1x8x32xf32> to vector<4x8x32xf32>
    %256 = arith.addf %253, %255 : vector<4x8x32xf32>
    %257 = vector.shape_cast %256 : vector<4x8x32xf32> to vector<32x32xf32>
    %c544 = arith.constant 544 : index
    %c0_81 = arith.constant 0 : index
    %258 = vector.load %arg1[%c544, %c0_81] : memref<688x128xf32, #tpu.memory_space<vmem>>, vector<32x64xf32>
    %cst_82 = arith.constant dense<0.000000e+00> : vector<32x64xf32>
    %259 = tpu.matmul %257, %258, %cst_82 {dimension_numbers = #tpu.dot_dimension_numbers<[1], [0], [0], [1], [0, 0, 1, 1], [], []>} : vector<32x32xf32>, vector<32x64xf32>, vector<32x64xf32> -> vector<32x64xf32>
    %c576 = arith.constant 576 : index
    %c0_83 = arith.constant 0 : index
    %260 = vector.load %arg1[%c576, %c0_83] : memref<688x128xf32, #tpu.memory_space<vmem>>, vector<1x64xf32>
    %261 = vector.broadcast %260 : vector<1x64xf32> to vector<32x64xf32>
    %262 = arith.addf %259, %261 : vector<32x64xf32>
    %263 = arith.negf %262 : vector<32x64xf32>
    %264 = math.exp %263 : vector<32x64xf32>
    %cst_84 = arith.constant 1.000000e+00 : f32
    %265 = vector.broadcast %cst_84 : f32 to vector<32x64xf32>
    %266 = arith.addf %265, %264 : vector<32x64xf32>
    %267 = arith.divf %265, %266 : vector<32x64xf32>
    %268 = arith.mulf %262, %267 : vector<32x64xf32>
    %c584 = arith.constant 584 : index
    %c0_85 = arith.constant 0 : index
    %269 = vector.load %arg1[%c584, %c0_85] : memref<688x128xf32, #tpu.memory_space<vmem>>, vector<64x32xf32>
    %cst_86 = arith.constant dense<0.000000e+00> : vector<32x32xf32>
    %270 = tpu.matmul %268, %269, %cst_86 {dimension_numbers = #tpu.dot_dimension_numbers<[1], [0], [0], [1], [0, 0, 1, 1], [], []>} : vector<32x64xf32>, vector<64x32xf32>, vector<32x32xf32> -> vector<32x32xf32>
    %c648 = arith.constant 648 : index
    %c0_87 = arith.constant 0 : index
    %271 = vector.load %arg1[%c648, %c0_87] : memref<688x128xf32, #tpu.memory_space<vmem>>, vector<1x32xf32>
    %272 = vector.broadcast %271 : vector<1x32xf32> to vector<32x32xf32>
    %273 = arith.addf %270, %272 : vector<32x32xf32>
    %274 = arith.addf %273, %257 : vector<32x32xf32>
    %c672 = arith.constant 672 : index
    %c0_88 = arith.constant 0 : index
    %275 = vector.load %arg1[%c672, %c0_88] : memref<688x128xf32, #tpu.memory_space<vmem>>, vector<8x32xf32>
    %c680 = arith.constant 680 : index
    %c0_89 = arith.constant 0 : index
    %276 = vector.load %arg1[%c680, %c0_89] : memref<688x128xf32, #tpu.memory_space<vmem>>, vector<8x32xf32>
    %277 = vector.shape_cast %274 : vector<32x32xf32> to vector<4x8x32xf32>
    %cst_90 = arith.constant dense<0.000000e+00> : vector<8xf32>
    %278 = vector.multi_reduction <add>, %277, %cst_90 [0, 2] : vector<4x8x32xf32> to vector<8xf32>
    %279 = vector.shape_cast %278 : vector<8xf32> to vector<1x8x1xf32>
    %280 = arith.mulf %277, %277 : vector<4x8x32xf32>
    %cst_91 = arith.constant dense<0.000000e+00> : vector<8xf32>
    %281 = vector.multi_reduction <add>, %280, %cst_91 [0, 2] : vector<4x8x32xf32> to vector<8xf32>
    %282 = vector.shape_cast %281 : vector<8xf32> to vector<1x8x1xf32>
    %cst_92 = arith.constant 7.812500e-03 : f32
    %283 = vector.broadcast %cst_92 : f32 to vector<1x8x1xf32>
    %284 = arith.mulf %279, %283 : vector<1x8x1xf32>
    %cst_93 = arith.constant 7.812500e-03 : f32
    %285 = vector.broadcast %cst_93 : f32 to vector<1x8x1xf32>
    %286 = arith.mulf %282, %285 : vector<1x8x1xf32>
    %287 = arith.mulf %284, %284 : vector<1x8x1xf32>
    %288 = arith.subf %286, %287 : vector<1x8x1xf32>
    %289 = vector.broadcast %284 : vector<1x8x1xf32> to vector<4x8x32xf32>
    %290 = arith.subf %277, %289 : vector<4x8x32xf32>
    %cst_94 = arith.constant 9.99999974E-6 : f32
    %291 = vector.broadcast %cst_94 : f32 to vector<1x8x1xf32>
    %292 = arith.addf %288, %291 : vector<1x8x1xf32>
    %293 = math.rsqrt %292 : vector<1x8x1xf32>
    %294 = vector.broadcast %293 : vector<1x8x1xf32> to vector<4x8x32xf32>
    %295 = arith.mulf %290, %294 : vector<4x8x32xf32>
    %296 = vector.shape_cast %275 : vector<8x32xf32> to vector<1x8x32xf32>
    %297 = vector.broadcast %296 : vector<1x8x32xf32> to vector<4x8x32xf32>
    %298 = arith.mulf %295, %297 : vector<4x8x32xf32>
    %299 = vector.shape_cast %276 : vector<8x32xf32> to vector<1x8x32xf32>
    %300 = vector.broadcast %299 : vector<1x8x32xf32> to vector<4x8x32xf32>
    %301 = arith.addf %298, %300 : vector<4x8x32xf32>
    %302 = vector.shape_cast %301 : vector<4x8x32xf32> to vector<32x32xf32>
    %c168 = arith.constant 168 : index
    %c0_95 = arith.constant 0 : index
    %303 = vector.load %arg1[%c168, %c0_95] : memref<688x128xf32, #tpu.memory_space<vmem>>, vector<32x1xf32>
    %cst_96 = arith.constant dense<0.000000e+00> : vector<32x1xf32>
    %304 = tpu.matmul %302, %303, %cst_96 {dimension_numbers = #tpu.dot_dimension_numbers<[1], [0], [0], [1], [0, 0, 1, 1], [], []>} : vector<32x32xf32>, vector<32x1xf32>, vector<32x1xf32> -> vector<32x1xf32>
    %c200 = arith.constant 200 : index
    %c0_97 = arith.constant 0 : index
    %305 = vector.load %arg1[%c200, %c0_97] : memref<688x128xf32, #tpu.memory_space<vmem>>, vector<1x1xf32>
    %306 = vector.broadcast %305 : vector<1x1xf32> to vector<32x1xf32>
    %307 = arith.addf %304, %306 : vector<32x1xf32>
    %c208 = arith.constant 208 : index
    %c0_98 = arith.constant 0 : index
    %308 = vector.load %arg1[%c208, %c0_98] : memref<688x128xf32, #tpu.memory_space<vmem>>, vector<32x1xf32>
    %cst_99 = arith.constant 5.000000e-01 : f32
    %309 = vector.broadcast %cst_99 : f32 to vector<32x1xf32>
    %310 = arith.cmpf ogt, %308, %309 : vector<32x1xf32>
    %311 = arith.negf %307 : vector<32x1xf32>
    %312 = math.exp %311 : vector<32x1xf32>
    %cst_100 = arith.constant 1.000000e+00 : f32
    %313 = vector.broadcast %cst_100 : f32 to vector<32x1xf32>
    %314 = arith.addf %313, %312 : vector<32x1xf32>
    %315 = arith.divf %313, %314 : vector<32x1xf32>
    %316 = arith.select %310, %315, %307 : vector<32x1xi1>, vector<32x1xf32>
    %c0_101 = arith.constant 0 : index
    %c0_102 = arith.constant 0 : index
    %317 = vector.load %arg2[%c0_101, %c0_102] : memref<32x1xf32, #tpu.memory_space<vmem>>, vector<32x1xf32>
    tpu.vector_store %arg2[%c0_101, %c0_102], %316 {strides = array<i32>} : memref<32x1xf32, #tpu.memory_space<vmem>>, vector<32x1xf32>,
    return
  }
}

</mosaic_0001>

<bundles_post_ra>
// kernel: tpu_custom_call.1
= control target key start
LH: loop header
LB: loop body
LE: loop exit
PB: predicated region body
PF: predicated region fallthrough
CT: control target
= control target key end

     0   :  { %7 = vsyncpa [#allocation3], 0  ;;  %s2282_s12 = smov [#allocation2]   ;;  %s2283_s14 = smov 128   ;;  %s2992_s0 = inlined_call_operand.vmem [shape: f32[32,1], index: 0, kind: input, shape index: {}]   ;;  %s2993_s1 = inlined_call_operand.hbm [shape: f32[688,128], index: 1, kind: input, shape index: {}]   ;;  %s2994_s2 = inlined_call_operand.vmem [shape: f32[32,1], index: 2, kind: output, shape index: {}]  }
   0x1   :  { %s14_s11 = sshll.u32 %s2993_s1, 4  ;;  %s16_s13 = sshll.u32 %s2282_s12, 4  ;;  %s15_s11 = int_to_ptr.hbm [resolvable:$true] %s14_s11  ;;  %s17_s13 = int_to_ptr.vmem [resolvable:$true] %s16_s13 }
   0x2   :  { %s2284_s15 = smov 8  }
   0x3   :  { %22 = dma.hbm_to_vmem [thread:$0]  %s15_s11, 11008, %s17_s13, [#allocation3], %s2283_s14, %s2283_s14, %s2284_s15  }
   0x4   :  { %2280 = dma.done.wait [#allocation3], 11008  }
   0x5   :  { %2281 = vsyncadd [#allocation3], 4294956288  ;;  %v2285_v0 = vmov 0   ;;  %v27_v1 = vld [vmem:[%s2992_s0] sm:$0xff]  ;;  %v29_v2 = vld [vmem:[%s2992_s0 + $0x10] sm:$0xff]  ;;  %vm85_vm0 = vcmask 261120  }
   0x6   :  { %2084 = vset.pattern.permute.xlu0 %v2285_v0  ;;  %2085 = vset.pattern.permute.xlu1 %v2285_v0  ;;  %v82_v3 = vld [vmem:[#allocation2 + $0x18] sm:$0xff]  ;;  %v81_v4 = vld [vmem:[#allocation2 + $0x10] sm:$0xff]  ;;  %v28_v5 = vld [vmem:[%s2992_s0 + $0x8] sm:$0xff]  ;;  %vm175_vm1 = vcmask 130048   ;;  %s2288_s23 = smov 96   ;;  %s2289_s24 = smov 80  }
   0x7   :  { %37 = vperm.xlu0 %2084, %v27_v1   ;;  %47 = vperm.xlu1 %2085, %v29_v2   ;;  %v30_v6 = vld [vmem:[%s2992_s0 + $0x18] sm:$0xff]  ;;  %v80_v7 = vld [vmem:[#allocation2 + $0x8] sm:$0xff]  ;;  %v79_v8 = vld [vmem:[#allocation2] sm:$0xff]  ;;  %s2286_s0 = smov 112   ;;  %s2290_s25 = smov 48  }
   0x8   :  { %110 = vmatpush.msra.mxu0 %v82_v3  ;;  %v130_v9 = vld [vmem:[#allocation2 + $0x108] sm:$0xff]  ;;  %v129_v10 = vld [vmem:[#allocation2 + $0x100] sm:$0xff]  ;;  %v128_v11 = vld [vmem:[#allocation2 + $0xf8] sm:$0xff]  ;;  %s2291_s26 = smov 64   ;;  %s2292_s27 = smov 16  }
   0x9   :  { %157 = vmatpush.msra.mxu1 %v130_v9  ;;  %v127_v12 = vld [vmem:[#allocation2 + $0xf0] sm:$0xff]  ;;  %v2324_v13 = vld [vmem:[#allocation2 + $0x28] sm:$0xff]  ;;  %v2333_v20 = vld [vmem:[#allocation2 + $0x38] sm:$0xff]  ;;  %s2293_s28 = smov 32  }
   0xa   :  { %111 = vmatpush.msra.mxu0 %v81_v4  ;;  %v2328_v14 = vld [vmem:[#allocation2 + $0x30] sm:$0xff]  ;;  %v31_v15 = vld [vmem:[#allocation2 + $0x48] sm:$0xff]  ;;  %v33_v25 = vld [vmem:[#allocation2 + $0x58] sm:$0xff] }
   0xb   :  { %158 = vmatpush.msra.mxu1 %v129_v10  ;;  %v59_v16 = vld [vmem:[#allocation2 + $0x68] sm:$0xff]  ;;  %v32_v21 = vld [vmem:[#allocation2 + $0x50] sm:$0xff]  ;;  %v2338_v29 = vld [vmem:[#allocation2 + $0x40] sm:$0xff] }
   0xc   :  { %112 = vmatpush.msra.mxu0 %v80_v7  ;;  %v60_v22 = vld [vmem:[#allocation2 + $0x70] sm:$0xff]  ;;  %v61_v30 = vld [vmem:[#allocation2 + $0x78] sm:$0xff]  ;;  %v34_v32 = vld [vmem:[#allocation2 + $0x60] sm:$0xff] }
   0xd   :  { %159 = vmatpush.msra.mxu1 %v128_v11  ;;  %v62_v35 = vld [vmem:[#allocation2 + $0x80] sm:$0xff]  ;;  %v2127_v43 = vld [vmem:[#allocation2 + $0x110] ss:$0 sm:$0xff]  ;;  %v2384_v63 = vld [vmem:[#allocation2 + $0x88] sm:$0xff] }
   0xe   :  { %113 = vmatpush.msra.mxu0 %v79_v8  ;;  %v2126_v39 = vld [vmem:[#allocation2 + $0x20] ss:$0 sm:$0xff]  ;;  %vm75_vm2 = vcmp.gt.f32.partialorder %v2384_v63, 0.5  ;;  %v2396_v4 = vld [vmem:[#allocation2 + $0x90] sm:$0xff]  ;;  %v2408_v9 = vld [vmem:[#allocation2 + $0x98] sm:$0xff] }
   0xf   :  { %42 = vperm.xlu0 %2084, %v28_v5   ;;  %52 = vperm.xlu1 %2085, %v30_v6   ;;  %vm76_vm5 = vcmp.gt.f32.partialorder %v2396_v4, 0.5  ;;  %vm77_vm8 = vcmp.gt.f32.partialorder %v2408_v9, 0.5 }
  0x10   :  { %160 = vmatpush.msra.mxu1 %v127_v12 }
  0x11   :  { %1936 = vmatmul.msk.f32.vlgmr.msra.gmra.mxu1 %vm85_vm0, %v2324_v13 }
  0x19   :  { %1937 = vmatmul.msk.f32.gmra.mxu1 %vm85_vm0, %v2328_v14 }
  0x21   :  { %1938 = vmatmul.msk.f32.gmra.mxu1 %vm85_vm0, %v2333_v20 }
  0x29   :  { %1939 = vmatmul.msk.f32.gmra.mxu1 %vm85_vm0, %v2338_v29 }
  0x79   :  { %v38_v17 = vpop.permute.xlu0 %37  ;;  %v48_v26 = vpop.permute.xlu1 %47 }
  0x7a   :  { %v55_v18 = vmul.f32 %v38_v17, %v31_v15  ;;  %v57_v28 = vmul.f32 %v48_v26, %v33_v25 }
  0x7c   :  { %v63_v19 = vadd.f32 %v59_v16, %v55_v18  ;;  %v65_v31 = vadd.f32 %v61_v30, %v57_v28  ;;  %v2420_v16 = vld [vmem:[#allocation2 + $0xa0] sm:$0xff] }
  0x7d   :  { %vm78_vm11 = vcmp.gt.f32.partialorder %v2420_v16, 0.5 }
  0x7e   :  { %1932 = vmatmul.msk.f32.vlgmr.msra.gmra.mxu0 %vm85_vm0, %v63_v19 }
  0x81   :  { %v43_v23 = vpop.permute.xlu0 %42  ;;  %v53_v33 = vpop.permute.xlu1 %52 }
  0x82   :  { %v56_v24 = vmul.f32 %v43_v23, %v32_v21  ;;  %v58_v34 = vmul.f32 %v53_v33, %v34_v32 }
  0x84   :  { %v64_v27 = vadd.f32 %v60_v22, %v56_v24  ;;  %v66_v36 = vadd.f32 %v62_v35, %v58_v34 }
  0x86   :  { %1933 = vmatmul.msk.f32.gmra.mxu0 %vm85_vm0, %v64_v27 }
  0x8e   :  { %1934 = vmatmul.msk.f32.gmra.mxu0 %vm85_vm0, %v65_v31  ;;  %v162_v37 = vpop.f32.mrf.mxu1 }
  0x8f   :  { %v163_v52 = vadd.f32 %v2127_v43, %v162_v37 }
  0x96   :  { %1935 = vmatmul.msk.f32.gmra.mxu0 %vm85_vm0, %v66_v36  ;;  %v165_v38 = vpop.f32.mrf.mxu1 }
  0x97   :  { %v166_v47 = vadd.f32 %v2127_v43, %v165_v38 }
  0x9e   :  { %v168_v42 = vpop.f32.mrf.mxu1 }
  0x9f   :  { %v169_v44 = vadd.f32 %v2127_v43, %v168_v42 }
  0xa6   :  { %v171_v53 = vpop.f32.mrf.mxu1 }
  0xa7   :  { %v172_v54 = vadd.f32 %v2127_v43, %v171_v53 }
  0xfb   :  { %v115_v40 = vpop.f32.mrf.mxu0 }
  0xfc   :  { %v2344_v41 = vadd.f32 %v2126_v39, %v115_v40 }
  0xfe   :  { %422 = vrot.lane.b32.xlu1 %v2344_v41, %s2286_s0 }
 0x103   :  { %v118_v45 = vpop.f32.mrf.mxu0 }
 0x104   :  { %v2348_v46 = vadd.f32 %v2126_v39, %v118_v45 }
 0x106   :  { %424 = vrot.lane.b32.xlu0 %v2348_v46, %s2286_s0  ;;  %418 = vrot.lane.b32.xlu1 %v169_v44, %s2286_s0 }
 0x10b   :  { %v121_v48 = vpop.f32.mrf.mxu0 }
 0x10c   :  { %v2360_v51 = vadd.f32 %v2126_v39, %v121_v48  ;;  %v2287_v48 = vmov 0.0  }
 0x10e   :  { %416 = vrot.lane.b32.xlu0 %v166_v47, %s2286_s0 }
 0x113   :  { %v124_v49 = vpop.f32.mrf.mxu0 }
 0x114   :  { %v2354_v50 = vadd.f32 %v2126_v39, %v124_v49 }
 0x116   :  { %428 = vrot.lane.b32.xlu2 %v2354_v50, %s2286_s0  ;;  %1940 = vmatpush.xpose.msk.msra.mxu2 %vm175_vm1, %v2354_v50 }
 0x11a   :  { %1941 = vmatpush.xpose.msk.msra.mxu2 %vm175_vm1, %v2360_v51 }
 0x11e   :  { %426 = vrot.lane.b32.xlu2 %v2360_v51, %s2286_s0  ;;  %1942 = vmatpush.xpose.msk.msra.mxu2 %vm175_vm1, %v2348_v46 }
 0x122   :  { %1943 = vmatpush.xpose.msk.msra.mxu2 %vm175_vm1, %v2344_v41 }
 0x125   :  { %1944 = vmatmul.msk.f32.vlgmr.msra.gmra.mxu2 %vm175_vm1, %v163_v52 }
 0x126   :  { %414 = vrot.lane.b32.xlu2 %v163_v52, %s2286_s0  ;;  %v2485_v52 = vpack.i.bf16 %v2360_v51, %v2354_v50 }
 0x12d   :  { %1945 = vmatmul.msk.f32.gmra.mxu2 %vm175_vm1, %v166_v47 }
 0x12e   :  { %420 = vrot.lane.b32.xlu2 %v172_v54, %s2286_s0 }
 0x135   :  { %1946 = vmatmul.msk.f32.gmra.mxu2 %vm175_vm1, %v169_v44 }
 0x13d   :  { %1947 = vmatmul.msk.f32.gmra.mxu2 %vm175_vm1, %v172_v54 }
 0x170   :  { %v429_v55 = vpop.permute.xlu2 %428  ;;  %v423_v58 = vpop.permute.xlu1 %422 }
 0x171   :  { %1964 = vmatpush.xpose.msk.msrb.mxu1 %vm175_vm1, %v429_v55 }
 0x178   :  { %v427_v56 = vpop.permute.xlu2 %426  ;;  %v425_v57 = vpop.permute.xlu0 %424 }
 0x179   :  { %1965 = vmatpush.xpose.msk.msrb.mxu1 %vm175_vm1, %v427_v56  ;;  %v419_v61 = vpop.permute.xlu1 %418 }
 0x17d   :  { %1966 = vmatpush.xpose.msk.msrb.mxu1 %vm175_vm1, %v425_v57 }
 0x180   :  { %v415_v59 = vpop.permute.xlu2 %414  ;;  %v417_v60 = vpop.permute.xlu0 %416 }
 0x181   :  { %1967 = vmatpush.xpose.msk.msrb.mxu1 %vm175_vm1, %v423_v58 }
 0x184   :  { %1968 = vmatmul.msk.f32.vlgmr.msrb.gmra.mxu1 %vm175_vm1, %v415_v59 }
 0x188   :  { %v421_v62 = vpop.permute.xlu2 %420 }
 0x18c   :  { %1969 = vmatmul.msk.f32.gmra.mxu1 %vm175_vm1, %v417_v60 }
 0x194   :  { %1970 = vmatmul.msk.f32.gmra.mxu1 %vm175_vm1, %v419_v61  ;;  %v2499_v61 = vpack.i.bf16 %v2344_v41, %v2348_v46 }
 0x19c   :  { %1971 = vmatmul.msk.f32.gmra.mxu1 %vm175_vm1, %v421_v62 }
 0x1a8   :  { %v217_v0 = vpop.f32.mrf.mxu2 }
 0x1a9   :  { %vm229_vm3 = vcmp.ne.f32.partialorder %v217_v0, 0.0 }
 0x1aa   :  { %vm2389_vm4 = vmand %vm75_vm2, %vm229_vm3 }
 0x1ab   :  { %v245_v2 = vsel %vm2389_vm4, %v217_v0, -1000000.0  ;;  %v1948_v49 = vsel %vm2389_vm4, 1.0, %v2287_v48 }
 0x1ac   :  { %v249_v3 = vsel %vm85_vm0, %v245_v2, -inf }
 0x1ad   :  { %250 = vmax.xlane.f32.xlu0 %v249_v3 }
 0x1b0   :  { %v220_v5 = vpop.f32.mrf.mxu2 }
 0x1b1   :  { %vm230_vm6 = vcmp.ne.f32.partialorder %v220_v5, 0.0 }
 0x1b2   :  { %vm2401_vm7 = vmand %vm76_vm5, %vm230_vm6 }
 0x1b3   :  { %v246_v7 = vsel %vm2401_vm7, %v220_v5, -1000000.0  ;;  %v1949_v59 = vsel %vm2401_vm7, 1.0, %v2287_v48 }
 0x1b4   :  { %v252_v8 = vsel %vm85_vm0, %v246_v7, -inf }
 0x1b5   :  { %253 = vmax.xlane.f32.xlu1 %v252_v8 }
 0x1b8   :  { %v223_v10 = vpop.f32.mrf.mxu2 }
 0x1b9   :  { %vm231_vm9 = vcmp.ne.f32.partialorder %v223_v10, 0.0 }
 0x1ba   :  { %vm2413_vm10 = vmand %vm77_vm8, %vm231_vm9 }
 0x1bb   :  { %v247_v12 = vsel %vm2413_vm10, %v223_v10, -1000000.0  ;;  %v1950_v5 = vsel %vm2413_vm10, 1.0, %v2287_v48 }
 0x1bc   :  { %v255_v15 = vsel %vm85_vm0, %v247_v12, -inf }
 0x1bd   :  { %256 = vmax.xlane.f32.xlu2 %v255_v15 }
 0x1c0   :  { %v226_v17 = vpop.f32.mrf.mxu2 }
 0x1c1   :  { %vm232_vm12 = vcmp.ne.f32.partialorder %v226_v17, 0.0 }
 0x1c2   :  { %vm2425_vm13 = vmand %vm78_vm11, %vm232_vm12 }
 0x1c3   :  { %v248_v19 = vsel %vm2425_vm13, %v226_v17, -1000000.0  ;;  %v1951_v10 = vsel %vm2425_vm13, 1.0, %v2287_v48 }
 0x1c4   :  { %v258_v21 = vsel %vm85_vm0, %v248_v19, -inf }
 0x1c5   :  { %259 = vmax.xlane.f32.xlu2 %v258_v21 }
 0x201   :  { %v463_v22 = vpop.f32.mrf.mxu1 }
 0x202   :  { %vm475_vm14 = vcmp.ne.f32.partialorder %v463_v22, 0.0 }
 0x203   :  { %vm2434_vm15 = vmand %vm75_vm2, %vm475_vm14 }
 0x204   :  { %v2440_v24 = vsel %vm2434_vm15, %v463_v22, -1000000.0 }
 0x205   :  { %v495_v25 = vsel %vm85_vm0, %v2440_v24, -inf }
 0x206   :  { %496 = vmax.xlane.f32.xlu0 %v495_v25 }
 0x209   :  { %v466_v26 = vpop.f32.mrf.mxu1 }
 0x20a   :  { %vm476_vm3 = vcmp.ne.f32.partialorder %v466_v26, 0.0 }
 0x20b   :  { %vm2446_vm6 = vmand %vm76_vm5, %vm476_vm3 }
 0x20c   :  { %v2452_v28 = vsel %vm2446_vm6, %v466_v26, -1000000.0  ;;  %v1972_v26 = vsel %vm2434_vm15, 1.0, %v2287_v48 }
 0x20d   :  { %v498_v30 = vsel %vm85_vm0, %v2452_v28, -inf }
 0x20e   :  { %499 = vmax.xlane.f32.xlu1 %v498_v30 }
 0x211   :  { %v469_v31 = vpop.f32.mrf.mxu1 }
 0x212   :  { %vm477_vm9 = vcmp.ne.f32.partialorder %v469_v31, 0.0 }
 0x213   :  { %vm2458_vm12 = vmand %vm77_vm8, %vm477_vm9 }
 0x214   :  { %v2464_v33 = vsel %vm2458_vm12, %v469_v31, -1000000.0  ;;  %v1974_v27 = vsel %vm2458_vm12, 1.0, %v2287_v48 }
 0x215   :  { %v501_v34 = vsel %vm85_vm0, %v2464_v33, -inf }
 0x216   :  { %502 = vmax.xlane.f32.xlu2 %v501_v34 }
 0x219   :  { %v472_v35 = vpop.f32.mrf.mxu1 }
 0x21a   :  { %vm478_vm14 = vcmp.ne.f32.partialorder %v472_v35, 0.0 }
 0x21b   :  { %vm2470_vm3 = vmand %vm78_vm11, %vm478_vm14 }
 0x21c   :  { %v2476_v37 = vsel %vm2470_vm3, %v472_v35, -1000000.0 }
 0x21d   :  { %v504_v38 = vsel %vm85_vm0, %v2476_v37, -inf }
 0x21e   :  { %505 = vmax.xlane.f32.xlu1 %v504_v38 }
 0x220   :  { %v251_v39 = vpop.xlane.xlu0 %250 }
 0x221   :  { %v261_v40 = vsub.f32 %v245_v2, %v251_v39 }
 0x223   :  { %v265_v42 = vmul.f32 1.442695, %v261_v40 }
 0x225   :  { %2136 = vpow2.f32 %v265_v42 }
 0x228   :  { %v254_v43 = vpop.xlane.xlu1 %253 }
 0x229   :  { %v262_v44 = vsub.f32 %v246_v7, %v254_v43 }
 0x22b   :  { %v2137_v45 = vpop.eup %2136  ;;  %v267_v47 = vmul.f32 1.442695, %v262_v44 }
 0x22c   :  { %v2487_v53 = vmul.f32 %v2137_v45, %v1948_v49 }
 0x22d   :  { %2138 = vpow2.f32 %v267_v47 }
 0x22e   :  { %2087 = vrot.lane.b32.xlu2 %v2485_v52, %s2288_s23  ;;  %v277_v54 = vsel %vm85_vm0, %v2487_v53, 0.0 }
 0x22f   :  { %278 = vadd.xlane.f32.xlu0 %v277_v54 }
 0x230   :  { %v257_v55 = vpop.xlane.xlu2 %256 }
 0x231   :  { %v263_v56 = vsub.f32 %v247_v12, %v257_v55 }
 0x233   :  { %v2139_v57 = vpop.eup %2138  ;;  %v269_v58 = vmul.f32 1.442695, %v263_v56 }
 0x234   :  { %v2495_v60 = vmul.f32 %v2139_v57, %v1949_v59 }
 0x235   :  { %2140 = vpow2.f32 %v269_v58 }
 0x236   :  { %v280_v62 = vsel %vm85_vm0, %v2495_v60, 0.0 }
 0x237   :  { %2092 = vrot.lane.b32.xlu1 %v2499_v61, %s2288_s23  ;;  %281 = vadd.xlane.f32.xlu0 %v280_v62 }
 0x238   :  { %v260_v0 = vpop.xlane.xlu2 %259 }
 0x239   :  { %v264_v1 = vsub.f32 %v248_v19, %v260_v0 }
 0x23b   :  { %v2141_v2 = vpop.eup %2140  ;;  %v271_v3 = vmul.f32 1.442695, %v264_v1 }
 0x23c   :  { %v2507_v6 = vmul.f32 %v2141_v2, %v1950_v5 }
 0x23d   :  { %2142 = vpow2.f32 %v271_v3 }
 0x23e   :  { %v283_v7 = vsel %vm85_vm0, %v2507_v6, 0.0 }
 0x23f   :  { %284 = vadd.xlane.f32.xlu0 %v283_v7 }
 0x243   :  { %v2143_v8 = vpop.eup %2142 }
 0x244   :  { %v2514_v12 = vmul.f32 %v2143_v8, %v1951_v10 }
 0x246   :  { %v286_v15 = vsel %vm85_vm0, %v2514_v12, 0.0 }
 0x247   :  { %287 = vadd.xlane.f32.xlu0 %v286_v15 }
 0x25b   :  { %2097 = vrot.lane.b32.xlu0 %v2485_v52, %s2289_s24 }
 0x263   :  { %2102 = vrot.lane.b32.xlu0 %v2499_v61, %s2289_s24 }
 0x279   :  { %v497_v11 = vpop.xlane.xlu0 %496 }
 0x27a   :  { %v507_v17 = vsub.f32 %v2440_v24, %v497_v11 }
 0x27c   :  { %v511_v19 = vmul.f32 1.442695, %v507_v17 }
 0x27e   :  { %2144 = vpow2.f32 %v511_v19 }
 0x281   :  { %v500_v21 = vpop.xlane.xlu1 %499 }
 0x282   :  { %v508_v18 = vsub.f32 %v2452_v28, %v500_v21  ;;  %v1973_v28 = vsel %vm2446_vm6, 1.0, %v2287_v48 }
 0x284   :  { %v2145_v22 = vpop.eup %2144  ;;  %v513_v25 = vmul.f32 1.442695, %v508_v18 }
 0x285   :  { %v2525_v30 = vmul.f32 %v2145_v22, %v1972_v26 }
 0x286   :  { %2146 = vpow2.f32 %v513_v25 }
 0x287   :  { %v523_v31 = vsel %vm85_vm0, %v2525_v30, 0.0 }
 0x288   :  { %524 = vadd.xlane.f32.xlu2 %v523_v31 }
 0x289   :  { %v503_v34 = vpop.xlane.xlu2 %502 }
 0x28a   :  { %v509_v24 = vsub.f32 %v2464_v33, %v503_v34 }
 0x28c   :  { %v2147_v35 = vpop.eup %2146  ;;  %v515_v38 = vmul.f32 1.442695, %v509_v24 }
 0x28d   :  { %v2533_v39 = vmul.f32 %v2147_v35, %v1973_v28 }
 0x28e   :  { %2148 = vpow2.f32 %v515_v38 }
 0x28f   :  { %v526_v23 = vsel %vm85_vm0, %v2533_v39, 0.0 }
 0x290   :  { %527 = vadd.xlane.f32.xlu1 %v526_v23 }
 0x291   :  { %v506_v40 = vpop.xlane.xlu1 %505  ;;  %v2088_v42 = vpop.permute.xlu2 %2087 }
 0x292   :  { %v510_v43 = vsub.f32 %v2476_v37, %v506_v40  ;;  %v2089_v44 = vunpack.i.l.bf16 %v2088_v42  ;;  %v2090_v47 = vunpack.i.h.bf16 %v2088_v42  ;;  %v1975_v37 = vsel %vm2470_vm3, 1.0, %v2287_v48 }
 0x294   :  { %v2149_v45 = vpop.eup %2148  ;;  %v517_v33 = vmul.f32 1.442695, %v510_v43  ;;  %349 = vmatpush.msra.mxu3 %v2089_v44 }
 0x295   :  { %v2541_v49 = vmul.f32 %v2149_v45, %v1974_v27 }
 0x296   :  { %2150 = vpow2.f32 %v517_v33  ;;  %350 = vmatpush.msra.mxu3 %v2090_v47 }
 0x297   :  { %v529_v54 = vsel %vm85_vm0, %v2541_v49, 0.0 }
 0x298   :  { %530 = vadd.xlane.f32.xlu0 %v529_v54  ;;  %v367_v54 = vld [vmem:[#allocation2 + $0x120] sm:$0xff] }
 0x299   :  { %394 = vmatpush.msrb.mxu0 %v367_v54 }
 0x29c   :  { %v2151_v55 = vpop.eup %2150 }
 0x29d   :  { %v2548_v56 = vmul.f32 %v2151_v55, %v1975_v37  ;;  %v366_v37 = vld [vmem:[#allocation2 + $0x118] sm:$0xff] }
 0x29e   :  { %395 = vmatpush.msrb.mxu0 %v366_v37 }
 0x29f   :  { %v532_v57 = vsel %vm85_vm0, %v2548_v56, 0.0 }
 0x2a0   :  { %533 = vadd.xlane.f32.xlu2 %v532_v57 }
 0x2a2   :  { %v279_v32 = vpop.xlane.xlu0 %278 }
 0x2a3   :  { %vm289_vm4 = vcmp.eq.f32.partialorder %v279_v32, 0.0 }
 0x2a4   :  { %v1952_v58 = vsel %vm289_vm4, 1.0, %v2287_v48 }
 0x2a5   :  { %v301_v59 = vadd.f32 %v1952_v58, %v279_v32 }
 0x2a7   :  { %2152 = vrcp.f32 %v301_v59 }
 0x2a9   :  { %v2093_v62 = vpop.permute.xlu1 %2092 }
 0x2aa   :  { %v282_v0 = vpop.xlane.xlu0 %281  ;;  %v2094_v1 = vunpack.i.l.bf16 %v2093_v62  ;;  %v2095_v36 = vunpack.i.h.bf16 %v2093_v62 }
 0x2ab   :  { %vm290_vm7 = vcmp.eq.f32.partialorder %v282_v0, 0.0 }
 0x2ac   :  { %v1953_v2 = vsel %vm290_vm7, 1.0, %v2287_v48  ;;  %351 = vmatpush.msra.mxu3 %v2094_v1  ;;  %1258 = vrot.lane.b32.xlu0 %v2360_v51, %s2290_s25  ;;  %v612_v1 = vld [vmem:[#allocation2 + $0x128] sm:$0xff] }
 0x2ad   :  { %v2153_v3 = vpop.eup %2152  ;;  %v302_v5 = vadd.f32 %v1953_v2, %v282_v0  ;;  %v613_v0 = vld [vmem:[#allocation2 + $0x130] sm:$0xff] }
 0x2ae   :  { %352 = vmatpush.msra.mxu3 %v2095_v36  ;;  %v309_v7 = vmul.f32 %v2153_v3, %v2487_v53  ;;  %640 = vmatpush.msrb.mxu2 %v613_v0 }
 0x2af   :  { %2154 = vrcp.f32 %v302_v5 }
 0x2b0   :  { %1956 = vmatmul.msk.f32.vlgmr.msra.gmra.mxu3 %vm85_vm0, %v309_v7  ;;  %641 = vmatpush.msrb.mxu2 %v612_v1 }
 0x2b2   :  { %v285_v8 = vpop.xlane.xlu0 %284 }
 0x2b3   :  { %vm291_vm10 = vcmp.eq.f32.partialorder %v285_v8, 0.0 }
 0x2b4   :  { %v1954_v10 = vsel %vm291_vm10, 1.0, %v2287_v48  ;;  %1006 = vrot.lane.b32.xlu0 %v2348_v46, %s2291_s26 }
 0x2b5   :  { %v2155_v15 = vpop.eup %2154  ;;  %v303_v11 = vadd.f32 %v1954_v10, %v285_v8 }
 0x2b6   :  { %v310_v17 = vmul.f32 %v2155_v15, %v2495_v60 }
 0x2b7   :  { %2156 = vrcp.f32 %v303_v11 }
 0x2b8   :  { %1957 = vmatmul.msk.f32.gmra.mxu3 %vm85_vm0, %v310_v17 }
 0x2ba   :  { %v288_v19 = vpop.xlane.xlu0 %287 }
 0x2bb   :  { %vm292_vm13 = vcmp.eq.f32.partialorder %v288_v19, 0.0 }
 0x2bc   :  { %v1955_v53 = vsel %vm292_vm13, 1.0, %v2287_v48  ;;  %1004 = vrot.lane.b32.xlu0 %v2344_v41, %s2291_s26 }
 0x2bd   :  { %v2157_v21 = vpop.eup %2156  ;;  %v304_v18 = vadd.f32 %v1955_v53, %v288_v19  ;;  %v2128_v19 = vld [vmem:[#allocation2 + $0x138] ss:$0 sm:$0xff] }
 0x2be   :  { %v311_v22 = vmul.f32 %v2157_v21, %v2507_v6 }
 0x2bf   :  { %2158 = vrcp.f32 %v304_v18 }
 0x2c0   :  { %1958 = vmatmul.msk.f32.gmra.mxu3 %vm85_vm0, %v311_v22 }
 0x2c5   :  { %v2159_v25 = vpop.eup %2158 }
 0x2c6   :  { %v312_v60 = vmul.f32 %v2159_v25, %v2514_v12 }
 0x2c8   :  { %1959 = vmatmul.msk.f32.gmra.mxu3 %vm85_vm0, %v312_v60 }
 0x2cd   :  { %v2098_v26 = vpop.permute.xlu0 %2097 }
 0x2ce   :  { %v2099_v31 = vunpack.i.l.bf16 %v2098_v26  ;;  %v2100_v34 = vunpack.i.h.bf16 %v2098_v26 }
 0x2d0   :  { %595 = vmatpush.msrb.mxu3 %v2099_v31 }
 0x2d2   :  { %596 = vmatpush.msrb.mxu3 %v2100_v34 }
 0x2d5   :  { %v2103_v24 = vpop.permute.xlu0 %2102 }
 0x2d6   :  { %v2104_v35 = vunpack.i.l.bf16 %v2103_v24  ;;  %v2105_v38 = vunpack.i.h.bf16 %v2103_v24 }
 0x2d8   :  { %597 = vmatpush.msrb.mxu3 %v2104_v35 }
 0x2da   :  { %598 = vmatpush.msrb.mxu3 %v2105_v38 }
 0x2fb   :  { %v525_v28 = vpop.xlane.xlu2 %524 }
 0x2fc   :  { %vm535_vm15 = vcmp.eq.f32.partialorder %v525_v28, 0.0 }
 0x2fd   :  { %v1976_v6 = vsel %vm535_vm15, 1.0, %v2287_v48 }
 0x2fe   :  { %v547_v23 = vadd.f32 %v1976_v6, %v525_v28 }
 0x300   :  { %2160 = vrcp.f32 %v547_v23 }
 0x303   :  { %v528_v40 = vpop.xlane.xlu1 %527 }
 0x304   :  { %vm536_vm6 = vcmp.eq.f32.partialorder %v528_v40, 0.0 }
 0x305   :  { %v1977_v12 = vsel %vm536_vm6, 1.0, %v2287_v48  ;;  %vm855_vm6 = vcmask 523264  }
 0x306   :  { %v2161_v42 = vpop.eup %2160  ;;  %v548_v43 = vadd.f32 %v1977_v12, %v528_v40 }
 0x307   :  { %v555_v44 = vmul.f32 %v2161_v42, %v2525_v30 }
 0x308   :  { %2162 = vrcp.f32 %v548_v43 }
 0x309   :  { %1980 = vmatmul.msk.f32.vlgmr.msrb.gmra.mxu3 %vm85_vm0, %v555_v44 }
 0x30b   :  { %v531_v45 = vpop.xlane.xlu0 %530 }
 0x30c   :  { %vm537_vm9 = vcmp.eq.f32.partialorder %v531_v45, 0.0 }
 0x30d   :  { %v1978_v33 = vsel %vm537_vm9, 1.0, %v2287_v48 }
 0x30e   :  { %v2163_v47 = vpop.eup %2162  ;;  %v549_v27 = vadd.f32 %v1978_v33, %v531_v45 }
 0x30f   :  { %v556_v55 = vmul.f32 %v2163_v47, %v2533_v39 }
 0x310   :  { %2164 = vrcp.f32 %v549_v27 }
 0x311   :  { %1981 = vmatmul.msk.f32.gmra.mxu3 %vm85_vm0, %v556_v55 }
 0x313   :  { %v534_v57 = vpop.xlane.xlu2 %533 }
 0x314   :  { %vm538_vm12 = vcmp.eq.f32.partialorder %v534_v57, 0.0 }
 0x315   :  { %v1979_v30 = vsel %vm538_vm12, 1.0, %v2287_v48 }
 0x316   :  { %v2165_v32 = vpop.eup %2164  ;;  %v550_v58 = vadd.f32 %v1979_v30, %v534_v57 }
 0x317   :  { %v557_v59 = vmul.f32 %v2165_v32, %v2541_v49 }
 0x318   :  { %2166 = vrcp.f32 %v550_v58 }
 0x319   :  { %1982 = vmatmul.msk.f32.gmra.mxu3 %vm85_vm0, %v557_v59  ;;  %v721_v59 = vld [vmem:[#allocation2 + $0x158] sm:$0xff] }
 0x31a   :  { %748 = vmatpush.msra.mxu0 %v721_v59 }
 0x31e   :  { %v2167_v62 = vpop.eup %2166 }
 0x31f   :  { %v558_v39 = vmul.f32 %v2167_v62, %v2548_v56  ;;  %v720_v62 = vld [vmem:[#allocation2 + $0x150] sm:$0xff] }
 0x320   :  { %749 = vmatpush.msra.mxu0 %v720_v62 }
 0x321   :  { %1983 = vmatmul.msk.f32.gmra.mxu3 %vm85_vm0, %v558_v39  ;;  %v718_v39 = vld [vmem:[#allocation2 + $0x140] sm:$0xff] }
 0x333   :  { %v354_v2 = vpop.f32.mrf.mxu3 }
 0x334   :  { %1960 = vmatmul.msk.f32.vlgmr.msrb.gmra.mxu0 %vm175_vm1, %v354_v2 }
 0x33b   :  { %v357_v36 = vpop.f32.mrf.mxu3 }
 0x33c   :  { %1961 = vmatmul.msk.f32.gmra.mxu0 %vm175_vm1, %v357_v36 }
 0x343   :  { %v360_v3 = vpop.f32.mrf.mxu3 }
 0x344   :  { %1962 = vmatmul.msk.f32.gmra.mxu0 %vm175_vm1, %v360_v3 }
 0x34b   :  { %v363_v49 = vpop.f32.mrf.mxu3 }
 0x34c   :  { %1963 = vmatmul.msk.f32.gmra.mxu0 %vm175_vm1, %v363_v49 }
 0x38c   :  { %v600_v5 = vpop.f32.mrf.mxu3 }
 0x38d   :  { %1984 = vmatmul.msk.f32.vlgmr.msrb.gmra.mxu2 %vm175_vm1, %v600_v5 }
 0x394   :  { %v603_v56 = vpop.f32.mrf.mxu3 }
 0x395   :  { %1985 = vmatmul.msk.f32.gmra.mxu2 %vm175_vm1, %v603_v56 }
 0x39c   :  { %v606_v7 = vpop.f32.mrf.mxu3 }
 0x39d   :  { %1986 = vmatmul.msk.f32.gmra.mxu2 %vm175_vm1, %v606_v7 }
 0x3a4   :  { %v609_v8 = vpop.f32.mrf.mxu3 }
 0x3a5   :  { %1987 = vmatmul.msk.f32.gmra.mxu2 %vm175_vm1, %v609_v8 }
 0x3b1   :  { %v397_v10 = vpop.f32.mrf.mxu0 }
 0x3b2   :  { %v410_v18 = vadd.f32 %v2128_v19, %v397_v10 }
 0x3b9   :  { %v400_v15 = vpop.f32.mrf.mxu0 }
 0x3ba   :  { %v411_v21 = vadd.f32 %v2128_v19, %v400_v15 }
 0x3c1   :  { %v403_v53 = vpop.f32.mrf.mxu0 }
 0x3c2   :  { %v412_v25 = vadd.f32 %v2128_v19, %v403_v53  ;;  %v663_v53 = vld [vmem:[#allocation2 + $0x1b0] sm:$0xff] }
 0x3c9   :  { %v406_v38 = vpop.f32.mrf.mxu0 }
 0x3ca   :  { %v413_v6 = vadd.f32 %v2128_v19, %v406_v38 }
 0x410   :  { %v643_v11 = vpop.f32.mrf.mxu2 }
 0x411   :  { %v655_v60 = vadd.f32 %v643_v11, %v410_v18  ;;  %v664_v18 = vld [vmem:[#allocation2 + $0x1b8] sm:$0xff] }
 0x413   :  { %v659_v24 = vadd.f32 %v655_v60, %v2324_v13 }
 0x415   :  { %v674_v23 = vmul.f32 %v659_v24, %v659_v24  ;;  %v665_v43 = vsel %vm85_vm0, %v659_v24, 0.0 }
 0x417   :  { %v678_v33 = vsel %vm85_vm0, %v674_v23, 0.0 }
 0x418   :  { %v646_v17 = vpop.f32.mrf.mxu2 }
 0x419   :  { %v656_v22 = vadd.f32 %v646_v17, %v411_v21 }
 0x41b   :  { %v2591_v31 = vadd.f32 %v656_v22, %v2328_v14 }
 0x41d   :  { %v675_v28 = vmul.f32 %v2591_v31, %v2591_v31  ;;  %v666_v40 = vsel %vm85_vm0, %v2591_v31, 0.0 }
 0x41e   :  { %v667_v44 = vadd.f32 %v666_v40, %v665_v43  ;;  %v850_v43 = vld [vmem:[#allocation2 + $0x190] sm:$0xff] }
 0x420   :  { %v649_v26 = vpop.f32.mrf.mxu2 }
 0x421   :  { %v657_v34 = vadd.f32 %v649_v26, %v412_v25 }
 0x423   :  { %v2595_v35 = vadd.f32 %v657_v34, %v2333_v20  ;;  %v679_v20 = vsel %vm85_vm0, %v675_v28, 0.0 }
 0x424   :  { %v680_v54 = vadd.f32 %v679_v20, %v678_v33  ;;  %v848_v20 = vld [vmem:[#allocation2 + $0x180] sm:$0xff]  ;;  %v846_v33 = vld [vmem:[#allocation2 + $0x170] sm:$0xff] }
 0x425   :  { %v676_v12 = vmul.f32 %v2595_v35, %v2595_v35  ;;  %v668_v13 = vsel %vm85_vm0, %v2595_v35, 0.0 }
 0x426   :  { %v669_v27 = vadd.f32 %v668_v13, %v667_v44  ;;  %v849_v13 = vld [vmem:[#allocation2 + $0x188] sm:$0xff]  ;;  %v847_v44 = vld [vmem:[#allocation2 + $0x178] sm:$0xff] }
 0x427   :  { %v681_v47 = vsel %vm85_vm0, %v676_v12, 0.0 }
 0x428   :  { %v652_v14 = vpop.f32.mrf.mxu2  ;;  %v682_v30 = vadd.f32 %v681_v47, %v680_v54 }
 0x429   :  { %v658_v42 = vadd.f32 %v652_v14, %v413_v6 }
 0x42b   :  { %v662_v45 = vadd.f32 %v658_v42, %v2338_v29  ;;  %v719_v29 = vld [vmem:[#allocation2 + $0x148] sm:$0xff]  ;;  %v851_v42 = vld [vmem:[#allocation2 + $0x198] sm:$0xff] }
 0x42c   :  { %750 = vmatpush.msra.mxu0 %v719_v29 }
 0x42d   :  { %v670_v55 = vsel %vm85_vm0, %v662_v45, 0.0  ;;  %v677_v37 = vmul.f32 %v662_v45, %v662_v45 }
 0x42e   :  { %v671_v57 = vadd.f32 %v670_v55, %v669_v27  ;;  %751 = vmatpush.msra.mxu0 %v718_v39  ;;  %v845_v27 = vld [vmem:[#allocation2 + $0x168] sm:$0xff] }
 0x42f   :  { %v683_v32 = vsel %vm85_vm0, %v677_v37, 0.0 }
 0x430   :  { %672 = vadd.xlane.f32.xlu1 %v671_v57  ;;  %v684_v58 = vadd.f32 %v683_v32, %v682_v30 }
 0x432   :  { %685 = vadd.xlane.f32.xlu2 %v684_v58 }
 0x4a3   :  { %v673_v0 = vpop.xlane.xlu1 %672 }
 0x4a4   :  { %v687_v1 = vmul.f32 0.0078125, %v673_v0 }
 0x4a5   :  { %v686_v2 = vpop.xlane.xlu2 %685 }
 0x4a6   :  { %v688_v36 = vmul.f32 0.0078125, %v686_v2  ;;  %v689_v3 = vmul.f32 %v687_v1, %v687_v1  ;;  %v691_v17 = vsub.f32 %v659_v24, %v687_v1  ;;  %v692_v25 = vsub.f32 %v2591_v31, %v687_v1 }
 0x4a7   :  { %v693_v38 = vsub.f32 %v2595_v35, %v687_v1  ;;  %v694_v23 = vsub.f32 %v662_v45, %v687_v1  ;;  %v852_v35 = vld [vmem:[#allocation2 + $0x1a0] sm:$0xff] }
 0x4a8   :  { %v690_v49 = vsub.f32 %v688_v36, %v689_v3  ;;  %876 = vmatpush.msra.mxu1 %v852_v35  ;;  %v2129_v45 = vld [vmem:[#allocation2 + $0x160] ss:$0 sm:$0xff] }
 0x4aa   :  { %v695_v5 = vadd.f32 1e-05, %v690_v49  ;;  %877 = vmatpush.msra.mxu1 %v851_v42 }
 0x4ac   :  { %2168 = vrsqrt.f32 %v695_v5  ;;  %vm702_vm3 = vweird.f32 %v695_v5  ;;  %878 = vmatpush.msra.mxu1 %v850_v43 }
 0x4ae   :  { %879 = vmatpush.msra.mxu1 %v849_v13 }
 0x4b0   :  { %880 = vmatpush.msra.mxu1 %v848_v20 }
 0x4b2   :  { %v2169_v56 = vpop.eup %2168  ;;  %881 = vmatpush.msra.mxu1 %v847_v44 }
 0x4b3   :  { %v697_v7 = vmul.f32 %v2169_v56, %v695_v5  ;;  %vm703_vm14 = vweird.f32 %v2169_v56 }
 0x4b4   :  { %vm704_vm4 = vmor %vm702_vm3, %vm703_vm14  ;;  %882 = vmatpush.msra.mxu1 %v846_v33 }
 0x4b5   :  { %v698_v8 = vmul.f32 %v2169_v56, %v697_v7 }
 0x4b6   :  { %883 = vmatpush.msra.mxu1 %v845_v27 }
 0x4b7   :  { %v699_v10 = vmul.f32 0.5, %v698_v8 }
 0x4b9   :  { %v700_v15 = vsub.f32 1.5, %v699_v10 }
 0x4bb   :  { %v701_v11 = vmul.f32 %v2169_v56, %v700_v15 }
 0x4bd   :  { %v705_v19 = vsel %vm704_vm4, %v2169_v56, %v701_v11 }
 0x4be   :  { %v706_v21 = vmul.f32 %v705_v19, %v691_v17  ;;  %v707_v26 = vmul.f32 %v705_v19, %v692_v25  ;;  %v708_v24 = vmul.f32 %v705_v19, %v693_v38  ;;  %v709_v31 = vmul.f32 %v705_v19, %v694_v23 }
 0x4c0   :  { %v710_v22 = vmul.f32 %v706_v21, %v663_v53  ;;  %v711_v34 = vmul.f32 %v707_v26, %v663_v53  ;;  %v712_v6 = vmul.f32 %v708_v24, %v663_v53  ;;  %v713_v12 = vmul.f32 %v709_v31, %v663_v53 }
 0x4c2   :  { %v2613_v60 = vadd.f32 %v710_v22, %v664_v18  ;;  %v2618_v28 = vadd.f32 %v711_v34, %v664_v18  ;;  %v2622_v40 = vadd.f32 %v712_v6, %v664_v18  ;;  %v2626_v14 = vadd.f32 %v713_v12, %v664_v18 }
 0x4c4   :  { %1988 = vmatmul.msk.f32.vlgmr.msra.gmra.mxu0 %vm85_vm0, %v2613_v60 }
 0x4cc   :  { %1989 = vmatmul.msk.f32.gmra.mxu0 %vm85_vm0, %v2618_v28 }
 0x4d4   :  { %1990 = vmatmul.msk.f32.gmra.mxu0 %vm85_vm0, %v2622_v40 }
 0x4dc   :  { %1991 = vmatmul.msk.f32.gmra.mxu0 %vm85_vm0, %v2626_v14 }
 0x541   :  { %v753_v47 = vpop.f32.mrf.mxu0 }
 0x542   :  { %v754_v54 = vadd.f32 %v2129_v45, %v753_v47 }
 0x544   :  { %v1992_v55 = vmul.f32 -1.442695, %v754_v54 }
 0x546   :  { %2170 = vpow2.f32 %v1992_v55 }
 0x549   :  { %v756_v37 = vpop.f32.mrf.mxu0 }
 0x54a   :  { %v757_v57 = vadd.f32 %v2129_v45, %v756_v37 }
 0x54c   :  { %v2171_v30 = vpop.eup %2170  ;;  %v1993_v32 = vmul.f32 -1.442695, %v757_v57 }
 0x54d   :  { %v777_v58 = vadd.f32 1.0, %v2171_v30 }
 0x54e   :  { %2172 = vpow2.f32 %v1993_v32 }
 0x54f   :  { %2174 = vrcp.f32 %v777_v58  ;;  %v792_v3 = vand.u32 2147483648, %v777_v58  ;;  %v790_v56 = vand.u32 2147483647, %v777_v58  ;;  %vm786_vm10 = vweird.f32 %v777_v58 }
 0x551   :  { %v759_v59 = vpop.f32.mrf.mxu0  ;;  %v793_v17 = vor.u32 1.1754944e-38, %v792_v3  ;;  %vm791_vm15 = vcmp.eq.f32.partialorder %v790_v56, 8.507059e+37 }
 0x552   :  { %v2630_v62 = vadd.f32 %v2129_v45, %v759_v59 }
 0x554   :  { %v2173_v29 = vpop.eup %2172  ;;  %v1994_v39 = vmul.f32 -1.442695, %v2630_v62 }
 0x555   :  { %v2175_v0 = vpop.eup %2174  ;;  %v778_v1 = vadd.f32 1.0, %v2173_v29 }
 0x556   :  { %v782_v2 = vmul.f32 %v2175_v0, %v777_v58  ;;  %2176 = vpow2.f32 %v1994_v39  ;;  %vm787_vm7 = vweird.f32 %v2175_v0 }
 0x557   :  { %2178 = vrcp.f32 %v778_v1  ;;  %vm788_vm13 = vmor %vm786_vm10, %vm787_vm7  ;;  %v807_v26 = vand.u32 2147483648, %v778_v1  ;;  %v805_v38 = vand.u32 2147483647, %v778_v1  ;;  %vm801_vm12 = vweird.f32 %v778_v1 }
 0x558   :  { %v783_v36 = vsub.f32 1.0, %v782_v2 }
 0x559   :  { %v762_v49 = vpop.f32.mrf.mxu0  ;;  %v808_v31 = vor.u32 1.1754944e-38, %v807_v26  ;;  %vm806_vm3 = vcmp.eq.f32.partialorder %v805_v38, 8.507059e+37 }
 0x55a   :  { %v784_v5 = vmul.f32 %v2175_v0, %v783_v36  ;;  %v2633_v7 = vadd.f32 %v2129_v45, %v762_v49  ;;  %v2130_v49 = vld [vmem:[#allocation2 + $0x1a8] ss:$0 sm:$0xff] }
 0x55c   :  { %v2177_v8 = vpop.eup %2176  ;;  %v785_v10 = vadd.f32 %v2175_v0, %v784_v5  ;;  %v1995_v15 = vmul.f32 -1.442695, %v2633_v7 }
 0x55d   :  { %v2179_v11 = vpop.eup %2178  ;;  %v779_v19 = vadd.f32 1.0, %v2177_v8 }
 0x55e   :  { %v789_v53 = vsel %vm788_vm13, %v2175_v0, %v785_v10  ;;  %v797_v21 = vmul.f32 %v2179_v11, %v778_v1  ;;  %2180 = vpow2.f32 %v1995_v15  ;;  %vm802_vm9 = vweird.f32 %v2179_v11 }
 0x55f   :  { %v794_v18 = vsel %vm791_vm15, %v793_v17, %v789_v53  ;;  %2182 = vrcp.f32 %v779_v19  ;;  %vm803_vm14 = vmor %vm801_vm12, %vm802_vm9  ;;  %v822_v44 = vand.u32 2147483648, %v779_v19  ;;  %v820_v33 = vand.u32 2147483647, %v779_v19 }
 0x560   :  { %v841_v22 = vmul.f32 %v794_v18, %v754_v54  ;;  %v798_v25 = vsub.f32 1.0, %v797_v21  ;;  %vm816_vm7 = vweird.f32 %v779_v19 }
 0x561   :  { %v823_v54 = vor.u32 1.1754944e-38, %v822_v44  ;;  %vm821_vm13 = vcmp.eq.f32.partialorder %v820_v33, 8.507059e+37  ;;  %v956_v44 = vld [vmem:[#allocation2 + $0x1d0] sm:$0xff] }
 0x562   :  { %v799_v34 = vmul.f32 %v2179_v11, %v798_v25  ;;  %1996 = vmatmul.msk.f32.vlgmr.msra.gmra.mxu1 %vm855_vm6, %v841_v22 }
 0x564   :  { %v2181_v24 = vpop.eup %2180  ;;  %v800_v6 = vadd.f32 %v2179_v11, %v799_v34 }
 0x565   :  { %v2183_v23 = vpop.eup %2182  ;;  %v780_v12 = vadd.f32 1.0, %v2181_v24 }
 0x566   :  { %v804_v35 = vsel %vm803_vm14, %v2179_v11, %v800_v6  ;;  %v812_v42 = vmul.f32 %v2183_v23, %v779_v19  ;;  %vm817_vm4 = vweird.f32 %v2183_v23 }
 0x567   :  { %v809_v43 = vsel %vm806_vm3, %v808_v31, %v804_v35  ;;  %2184 = vrcp.f32 %v780_v12  ;;  %vm818_vm10 = vmor %vm816_vm7, %vm817_vm4  ;;  %v835_v29 = vand.u32 2147483647, %v780_v12  ;;  %vm831_vm9 = vweird.f32 %v780_v12 }
 0x568   :  { %v842_v13 = vmul.f32 %v809_v43, %v757_v57  ;;  %v813_v20 = vsub.f32 1.0, %v812_v42  ;;  %v837_v57 = vand.u32 2147483648, %v780_v12 }
 0x569   :  { %vm836_vm14 = vcmp.eq.f32.partialorder %v835_v29, 8.507059e+37 }
 0x56a   :  { %v814_v45 = vmul.f32 %v2183_v23, %v813_v20  ;;  %1997 = vmatmul.msk.f32.gmra.mxu1 %vm855_vm6, %v842_v13  ;;  %v838_v0 = vor.u32 1.1754944e-38, %v837_v57  ;;  %v958_v13 = vld [vmem:[#allocation2 + $0x1e0] sm:$0xff]  ;;  %v957_v20 = vld [vmem:[#allocation2 + $0x1d8] sm:$0xff] }
 0x56c   :  { %v815_v47 = vadd.f32 %v2183_v23, %v814_v45 }
 0x56d   :  { %v2185_v27 = vpop.eup %2184 }
 0x56e   :  { %v819_v55 = vsel %vm818_vm10, %v2183_v23, %v815_v47  ;;  %v827_v37 = vmul.f32 %v2185_v27, %v780_v12  ;;  %vm832_vm15 = vweird.f32 %v2185_v27 }
 0x56f   :  { %v824_v30 = vsel %vm821_vm13, %v823_v54, %v819_v55  ;;  %vm833_vm12 = vmor %vm831_vm9, %vm832_vm15 }
 0x570   :  { %v843_v32 = vmul.f32 %v824_v30, %v2630_v62  ;;  %v828_v58 = vsub.f32 1.0, %v827_v37  ;;  %v1259_v30 = vpop.permute.xlu0 %1258 }
 0x572   :  { %v829_v59 = vmul.f32 %v2185_v27, %v828_v58  ;;  %1998 = vmatmul.msk.f32.gmra.mxu1 %vm855_vm6, %v843_v32 }
 0x574   :  { %v830_v39 = vadd.f32 %v2185_v27, %v829_v59 }
 0x576   :  { %v834_v1 = vsel %vm833_vm12, %v2185_v27, %v830_v39 }
 0x577   :  { %v839_v2 = vsel %vm836_vm14, %v838_v0, %v834_v1  ;;  %v901_v0 = vld [vmem:[#allocation2 + $0x1c0] sm:$0xff] }
 0x578   :  { %v844_v36 = vmul.f32 %v839_v2, %v2633_v7  ;;  %v902_v2 = vld [vmem:[#allocation2 + $0x1c8] sm:$0xff] }
 0x57a   :  { %1999 = vmatmul.msk.f32.gmra.mxu1 %vm855_vm6, %v844_v36 }
 0x5df   :  { %v885_v3 = vpop.f32.mrf.mxu1 }
 0x5e0   :  { %v886_v56 = vadd.f32 %v2130_v49, %v885_v3 }
 0x5e2   :  { %v2646_v11 = vadd.f32 %v886_v56, %v2613_v60 }
 0x5e4   :  { %v912_v19 = vmul.f32 %v2646_v11, %v2646_v11  ;;  %v903_v60 = vsel %vm85_vm0, %v2646_v11, 0.0 }
 0x5e6   :  { %v916_v34 = vsel %vm85_vm0, %v912_v19, 0.0 }
 0x5e7   :  { %v888_v62 = vpop.f32.mrf.mxu1 }
 0x5e8   :  { %v889_v5 = vadd.f32 %v2130_v49, %v888_v62  ;;  %v1007_v62 = vpop.permute.xlu0 %1006 }
 0x5ea   :  { %v2643_v10 = vadd.f32 %v889_v5, %v2618_v28 }
 0x5ec   :  { %v913_v7 = vmul.f32 %v2643_v10, %v2643_v10  ;;  %v904_v53 = vsel %vm85_vm0, %v2643_v10, 0.0 }
 0x5ed   :  { %v905_v25 = vadd.f32 %v904_v53, %v903_v60 }
 0x5ee   :  { %v917_v22 = vsel %vm85_vm0, %v913_v7, 0.0 }
 0x5ef   :  { %v891_v8 = vpop.f32.mrf.mxu1  ;;  %v918_v6 = vadd.f32 %v917_v22, %v916_v34  ;;  %v2131_v22 = vld [vmem:[#allocation2 + $0x1f0] ss:$0 sm:$0xff] }
 0x5f0   :  { %v892_v15 = vadd.f32 %v2130_v49, %v891_v8  ;;  %v1005_v19 = vpop.permute.xlu0 %1004 }
 0x5f2   :  { %v2649_v17 = vadd.f32 %v892_v15, %v2622_v40 }
 0x5f4   :  { %v914_v28 = vmul.f32 %v2649_v17, %v2649_v17  ;;  %v906_v40 = vsel %vm85_vm0, %v2649_v17, 0.0 }
 0x5f5   :  { %v907_v24 = vadd.f32 %v906_v40, %v905_v25 }
 0x5f6   :  { %v919_v38 = vsel %vm85_vm0, %v914_v28, 0.0 }
 0x5f7   :  { %v894_v21 = vpop.f32.mrf.mxu1  ;;  %v920_v35 = vadd.f32 %v919_v38, %v918_v6 }
 0x5f8   :  { %v895_v18 = vadd.f32 %v2130_v49, %v894_v21 }
 0x5fa   :  { %v2665_v26 = vadd.f32 %v895_v18, %v2626_v14  ;;  %v959_v14 = vld [vmem:[#allocation2 + $0x1e8] sm:$0xff] }
 0x5fb   :  { %986 = vmatpush.msra.mxu3 %v959_v14 }
 0x5fc   :  { %v908_v23 = vsel %vm85_vm0, %v2665_v26, 0.0  ;;  %v915_v31 = vmul.f32 %v2665_v26, %v2665_v26 }
 0x5fd   :  { %v909_v12 = vadd.f32 %v908_v23, %v907_v24  ;;  %987 = vmatpush.msra.mxu3 %v958_v13 }
 0x5fe   :  { %v921_v42 = vsel %vm85_vm0, %v915_v31, 0.0 }
 0x5ff   :  { %910 = vadd.xlane.f32.xlu1 %v909_v12  ;;  %v922_v43 = vadd.f32 %v921_v42, %v920_v35  ;;  %988 = vmatpush.msra.mxu3 %v957_v20 }
 0x601   :  { %923 = vadd.xlane.f32.xlu2 %v922_v43  ;;  %989 = vmatpush.msra.mxu3 %v956_v44 }
 0x618   :  { %1260 = vrot.lane.b32.xlu1 %v2354_v50, %s2290_s25 }
 0x619   :  { %1010 = vrot.lane.b32.xlu2 %v2354_v50, %s2291_s26 }
 0x620   :  { %1008 = vrot.lane.b32.xlu1 %v2360_v51, %s2291_s26 }
 0x621   :  { %1256 = vrot.lane.b32.xlu2 %v2348_v46, %s2290_s25 }
 0x628   :  { %1254 = vrot.lane.b32.xlu1 %v2344_v41, %s2290_s25 }
 0x672   :  { %v911_v45 = vpop.xlane.xlu1 %910 }
 0x673   :  { %v925_v33 = vmul.f32 0.0078125, %v911_v45 }
 0x674   :  { %v924_v50 = vpop.xlane.xlu2 %923 }
 0x675   :  { %v926_v47 = vmul.f32 0.0078125, %v924_v50  ;;  %v927_v27 = vmul.f32 %v925_v33, %v925_v33  ;;  %v929_v29 = vsub.f32 %v2646_v11, %v925_v33  ;;  %v930_v3 = vsub.f32 %v2643_v10, %v925_v33 }
 0x676   :  { %v931_v11 = vsub.f32 %v2649_v17, %v925_v33  ;;  %v932_v21 = vsub.f32 %v2665_v26, %v925_v33 }
 0x677   :  { %v928_v51 = vsub.f32 %v926_v47, %v927_v27 }
 0x679   :  { %v933_v54 = vadd.f32 1e-05, %v928_v51 }
 0x67b   :  { %2186 = vrsqrt.f32 %v933_v54  ;;  %vm940_vm4 = vweird.f32 %v933_v54 }
 0x67c   :  { %v1011_v46 = vpop.permute.xlu2 %1010 }
 0x67d   :  { %2004 = vmatpush.xpose.msk.msra.mxu2 %vm175_vm1, %v1011_v46 }
 0x681   :  { %v2187_v41 = vpop.eup %2186 }
 0x682   :  { %v935_v55 = vmul.f32 %v2187_v41, %v933_v54  ;;  %vm941_vm3 = vweird.f32 %v2187_v41 }
 0x683   :  { %vm942_vm7 = vmor %vm940_vm4, %vm941_vm3 }
 0x684   :  { %v936_v37 = vmul.f32 %v2187_v41, %v935_v55  ;;  %v1257_v8 = vpop.permute.xlu2 %1256 }
 0x686   :  { %v937_v32 = vmul.f32 0.5, %v936_v37 }
 0x688   :  { %v938_v58 = vsub.f32 1.5, %v937_v32 }
 0x68a   :  { %v939_v57 = vmul.f32 %v2187_v41, %v938_v58  ;;  %v1261_v59 = vpop.permute.xlu1 %1260 }
 0x68b   :  { %2028 = vmatpush.xpose.msk.msrb.mxu3 %vm175_vm1, %v1261_v59 }
 0x68c   :  { %v943_v39 = vsel %vm942_vm7, %v2187_v41, %v939_v57 }
 0x68d   :  { %v944_v1 = vmul.f32 %v943_v39, %v929_v29  ;;  %v945_v5 = vmul.f32 %v943_v39, %v930_v3  ;;  %v946_v10 = vmul.f32 %v943_v39, %v931_v11  ;;  %v947_v60 = vmul.f32 %v943_v39, %v932_v21 }
 0x68f   :  { %2029 = vmatpush.xpose.msk.msrb.mxu3 %vm175_vm1, %v1259_v30  ;;  %v948_v36 = vmul.f32 %v944_v1, %v901_v0  ;;  %v949_v15 = vmul.f32 %v945_v5, %v901_v0  ;;  %v950_v28 = vmul.f32 %v946_v10, %v901_v0  ;;  %v951_v17 = vmul.f32 %v947_v60, %v901_v0 }
 0x691   :  { %v2689_v49 = vadd.f32 %v948_v36, %v902_v2  ;;  %v2697_v7 = vadd.f32 %v949_v15, %v902_v2  ;;  %v2704_v18 = vadd.f32 %v950_v28, %v902_v2  ;;  %v2708_v40 = vadd.f32 %v951_v17, %v902_v2 }
 0x692   :  { %v1009_v56 = vpop.permute.xlu1 %1008 }
 0x693   :  { %2000 = vmatmul.msk.f32.vlgmr.msra.gmra.mxu3 %vm85_vm0, %v2689_v49  ;;  %2005 = vmatpush.xpose.msk.msra.mxu2 %vm175_vm1, %v1009_v56 }
 0x694   :  { %2030 = vmatpush.xpose.msk.msrb.mxu3 %vm175_vm1, %v1257_v8 }
 0x697   :  { %2006 = vmatpush.xpose.msk.msra.mxu2 %vm175_vm1, %v1007_v62 }
 0x69a   :  { %v1255_v53 = vpop.permute.xlu1 %1254 }
 0x69b   :  { %2001 = vmatmul.msk.f32.gmra.mxu3 %vm85_vm0, %v2697_v7  ;;  %2007 = vmatpush.xpose.msk.msra.mxu2 %vm175_vm1, %v1005_v19 }
 0x69c   :  { %2031 = vmatpush.xpose.msk.msrb.mxu3 %vm175_vm1, %v1255_v53 }
 0x6a3   :  { %2002 = vmatmul.msk.f32.gmra.mxu3 %vm85_vm0, %v2704_v18 }
 0x6ab   :  { %2003 = vmatmul.msk.f32.gmra.mxu3 %vm85_vm0, %v2708_v40 }
 0x716   :  { %v991_v25 = vpop.f32.mrf.mxu3 }
 0x717   :  { %v992_v34 = vadd.f32 %v2131_v22, %v991_v25 }
 0x719   :  { %1246 = vrot.lane.b32.xlu2 %v992_v34, %s2286_s0  ;;  %2008 = vmatmul.msk.f32.vlgmr.msra.gmra.mxu2 %vm175_vm1, %v992_v34 }
 0x71e   :  { %v994_v26 = vpop.f32.mrf.mxu3 }
 0x71f   :  { %v995_v38 = vadd.f32 %v2131_v22, %v994_v26 }
 0x721   :  { %1248 = vrot.lane.b32.xlu1 %v995_v38, %s2286_s0  ;;  %2009 = vmatmul.msk.f32.gmra.mxu2 %vm175_vm1, %v995_v38 }
 0x726   :  { %v997_v24 = vpop.f32.mrf.mxu3 }
 0x727   :  { %v998_v6 = vadd.f32 %v2131_v22, %v997_v24 }
 0x729   :  { %1250 = vrot.lane.b32.xlu2 %v998_v6, %s2286_s0  ;;  %2010 = vmatmul.msk.f32.gmra.mxu2 %vm175_vm1, %v998_v6 }
 0x72e   :  { %v1000_v23 = vpop.f32.mrf.mxu3 }
 0x72f   :  { %v1001_v31 = vadd.f32 %v2131_v22, %v1000_v23 }
 0x731   :  { %1252 = vrot.lane.b32.xlu0 %v1001_v31, %s2286_s0  ;;  %2011 = vmatmul.msk.f32.gmra.mxu2 %vm175_vm1, %v1001_v31 }
 0x773   :  { %v1247_v12 = vpop.permute.xlu2 %1246 }
 0x774   :  { %2032 = vmatmul.msk.f32.vlgmr.msrb.gmra.mxu3 %vm175_vm1, %v1247_v12 }
 0x783   :  { %v1251_v42 = vpop.permute.xlu2 %1250 }
 0x793   :  { %v1249_v35 = vpop.permute.xlu1 %1248 }
 0x794   :  { %2033 = vmatmul.msk.f32.gmra.mxu3 %vm175_vm1, %v1249_v35 }
 0x79c   :  { %v1049_v43 = vpop.f32.mrf.mxu2  ;;  %2034 = vmatmul.msk.f32.gmra.mxu3 %vm175_vm1, %v1251_v42 }
 0x79d   :  { %vm1061_vm10 = vcmp.ne.f32.partialorder %v1049_v43, 0.0 }
 0x79e   :  { %vm2725_vm13 = vmand %vm75_vm2, %vm1061_vm10 }
 0x79f   :  { %v1077_v13 = vsel %vm2725_vm13, %v1049_v43, -1000000.0  ;;  %v2012_v5 = vsel %vm2725_vm13, 1.0, %v2287_v48 }
 0x7a0   :  { %v1081_v20 = vsel %vm85_vm0, %v1077_v13, -inf }
 0x7a1   :  { %1082 = vmax.xlane.f32.xlu2 %v1081_v20 }
 0x7a3   :  { %v1253_v44 = vpop.permute.xlu0 %1252 }
 0x7a4   :  { %v1052_v45 = vpop.f32.mrf.mxu2  ;;  %2035 = vmatmul.msk.f32.gmra.mxu3 %vm175_vm1, %v1253_v44 }
 0x7a5   :  { %vm1062_vm15 = vcmp.ne.f32.partialorder %v1052_v45, 0.0 }
 0x7a6   :  { %vm2735_vm9 = vmand %vm76_vm5, %vm1062_vm15 }
 0x7a7   :  { %v1078_v50 = vsel %vm2735_vm9, %v1052_v45, -1000000.0  ;;  %v2013_v21 = vsel %vm2735_vm9, 1.0, %v2287_v48 }
 0x7a8   :  { %v1084_v47 = vsel %vm85_vm0, %v1078_v50, -inf }
 0x7a9   :  { %1085 = vmax.xlane.f32.xlu1 %v1084_v47 }
 0x7ac   :  { %v1055_v27 = vpop.f32.mrf.mxu2 }
 0x7ad   :  { %vm1063_vm12 = vcmp.ne.f32.partialorder %v1055_v27, 0.0 }
 0x7ae   :  { %vm2744_vm14 = vmand %vm77_vm8, %vm1063_vm12 }
 0x7af   :  { %v2750_v54 = vsel %vm2744_vm14, %v1055_v27, -1000000.0 }
 0x7b0   :  { %v1087_v46 = vsel %vm85_vm0, %v2750_v54, -inf }
 0x7b1   :  { %1088 = vmax.xlane.f32.xlu0 %v1087_v46 }
 0x7b4   :  { %v1058_v41 = vpop.f32.mrf.mxu2 }
 0x7b5   :  { %vm1064_vm3 = vcmp.ne.f32.partialorder %v1058_v41, 0.0 }
 0x7b6   :  { %vm2756_vm4 = vmand %vm78_vm11, %vm1064_vm3 }
 0x7b7   :  { %v2762_v37 = vsel %vm2756_vm4, %v1058_v41, -1000000.0  ;;  %v2015_v51 = vsel %vm2756_vm4, 1.0, %v2287_v48 }
 0x7b8   :  { %v1090_v30 = vsel %vm85_vm0, %v2762_v37, -inf }
 0x7b9   :  { %1091 = vmax.xlane.f32.xlu2 %v1090_v30 }
 0x7f7   :  { %v1295_v32 = vpop.f32.mrf.mxu3 }
 0x7f8   :  { %vm1307_vm7 = vcmp.ne.f32.partialorder %v1295_v32, 0.0 }
 0x7f9   :  { %vm2768_vm10 = vmand %vm75_vm2, %vm1307_vm7 }
 0x7fa   :  { %v1323_v57 = vsel %vm2768_vm10, %v1295_v32, -1000000.0  ;;  %v2036_v24 = vsel %vm2768_vm10, 1.0, %v2287_v48 }
 0x7fb   :  { %v1327_v59 = vsel %vm85_vm0, %v1323_v57, -inf }
 0x7fc   :  { %1328 = vmax.xlane.f32.xlu1 %v1327_v59 }
 0x814   :  { %v1083_v29 = vpop.xlane.xlu2 %1082 }
 0x815   :  { %v1093_v39 = vsub.f32 %v1077_v13, %v1083_v29 }
 0x817   :  { %v1097_v0 = vmul.f32 1.442695, %v1093_v39  ;;  %v1298_v1 = vpop.f32.mrf.mxu3  ;;  %v2014_v39 = vsel %vm2744_vm14, 1.0, %v2287_v48 }
 0x818   :  { %vm1308_vm15 = vcmp.ne.f32.partialorder %v1298_v1, 0.0 }
 0x819   :  { %2188 = vpow2.f32 %v1097_v0  ;;  %vm2777_vm12 = vmand %vm76_vm5, %vm1308_vm15 }
 0x81a   :  { %v1324_v2 = vsel %vm2777_vm12, %v1298_v1, -1000000.0  ;;  %v2037_v47 = vsel %vm2777_vm12, 1.0, %v2287_v48 }
 0x81b   :  { %v1330_v36 = vsel %vm85_vm0, %v1324_v2, -inf }
 0x81c   :  { %1331 = vmax.xlane.f32.xlu0 %v1330_v36  ;;  %v1086_v9 = vpop.xlane.xlu1 %1085 }
 0x81d   :  { %v1094_v10 = vsub.f32 %v1078_v50, %v1086_v9 }
 0x81f   :  { %v2189_v3 = vpop.eup %2188  ;;  %v1301_v62 = vpop.f32.mrf.mxu3  ;;  %v1099_v19 = vmul.f32 1.442695, %v1094_v10 }
 0x820   :  { %vm1309_vm2 = vcmp.ne.f32.partialorder %v1301_v62, 0.0  ;;  %v2787_v56 = vmul.f32 %v2189_v3, %v2012_v5 }
 0x821   :  { %vm2791_vm5 = vmand %vm77_vm8, %vm1309_vm2  ;;  %2190 = vpow2.f32 %v1099_v19 }
 0x822   :  { %v1109_v8 = vsel %vm85_vm0, %v2787_v56, 0.0  ;;  %v1325_v15 = vsel %vm2791_vm5, %v1301_v62, -1000000.0 }
 0x823   :  { %1110 = vadd.xlane.f32.xlu1 %v1109_v8  ;;  %v1333_v11 = vsel %vm85_vm0, %v1325_v15, -inf }
 0x824   :  { %1334 = vmax.xlane.f32.xlu2 %v1333_v11  ;;  %v1089_v31 = vpop.xlane.xlu0 %1088 }
 0x825   :  { %v1095_v14 = vsub.f32 %v2750_v54, %v1089_v31 }
 0x827   :  { %v1304_v53 = vpop.f32.mrf.mxu3  ;;  %v2191_v28 = vpop.eup %2190  ;;  %v1101_v13 = vmul.f32 1.442695, %v1095_v14 }
 0x828   :  { %vm1310_vm8 = vcmp.ne.f32.partialorder %v1304_v53, 0.0  ;;  %v2812_v17 = vmul.f32 %v2191_v28, %v2013_v21 }
 0x829   :  { %vm2808_vm13 = vmand %vm78_vm11, %vm1310_vm8 }
 0x82a   :  { %v1112_v22 = vsel %vm85_vm0, %v2812_v17, 0.0  ;;  %v2039_v19 = vsel %vm2808_vm13, 1.0, %v2287_v48 }
 0x82c   :  { %v1092_v12 = vpop.xlane.xlu2 %1091 }
 0x82d   :  { %v1096_v44 = vsub.f32 %v2762_v37, %v1092_v12 }
 0x82f   :  { %v1103_v27 = vmul.f32 1.442695, %v1096_v44 }
 0x830   :  { %2117 = vrot.lane.b32.xlu0 %v2499_v61, %s2292_s27 }
 0x83c   :  { %2112 = vrot.lane.b32.xlu1 %v2485_v52, %s2293_s28  ;;  %2107 = vrot.lane.b32.xlu2 %v2485_v52, %s2292_s27  ;;  %v2816_v52 = vsel %vm2808_vm13, %v1304_v53, -1000000.0 }
 0x83d   :  { %v1336_v25 = vsel %vm85_vm0, %v2816_v52, -inf }
 0x865   :  { %1113 = vadd.xlane.f32.xlu2 %v1112_v22 }
 0x866   :  { %1337 = vmax.xlane.f32.xlu1 %v1336_v25 }
 0x86f   :  { %v1329_v34 = vpop.xlane.xlu1 %1328 }
 0x870   :  { %v1339_v16 = vsub.f32 %v1323_v57, %v1329_v34  ;;  %v2038_v57 = vsel %vm2791_vm5, 1.0, %v2287_v48 }
 0x872   :  { %v1343_v26 = vmul.f32 1.442695, %v1339_v16 }
 0x874   :  { %2192 = vpow2.f32 %v1343_v26 }
 0x87a   :  { %v2193_v38 = vpop.eup %2192 }
 0x87b   :  { %v2825_v6 = vmul.f32 %v2193_v38, %v2036_v24 }
 0x87d   :  { %v1355_v23 = vsel %vm85_vm0, %v2825_v6, 0.0 }
 0x87e   :  { %1356 = vadd.xlane.f32.xlu0 %v1355_v23 }
 0x87f   :  { %2122 = vrot.lane.b32.xlu1 %v2499_v61, %s2293_s28 }
 0x88f   :  { %v1332_v35 = vpop.xlane.xlu0 %1331 }
 0x890   :  { %v1340_v42 = vsub.f32 %v1324_v2, %v1332_v35 }
 0x892   :  { %v1345_v43 = vmul.f32 1.442695, %v1340_v42 }
 0x894   :  { %2194 = vpow2.f32 %v1345_v43 }
 0x895   :  { %2196 = vpow2.f32 %v1101_v13 }
 0x896   :  { %v1111_v2 = vpop.xlane.xlu1 %1110 }
 0x897   :  { %v1335_v20 = vpop.xlane.xlu2 %1334  ;;  %vm1121_vm11 = vcmp.eq.f32.partialorder %v1111_v2, 0.0 }
 0x898   :  { %v1341_v45 = vsub.f32 %v1325_v15, %v1335_v20  ;;  %v2016_v53 = vsel %vm1121_vm11, 1.0, %v2287_v48 }
 0x899   :  { %v1133_v25 = vadd.f32 %v2016_v53, %v1111_v2 }
 0x89a   :  { %v2195_v33 = vpop.eup %2194  ;;  %v1347_v50 = vmul.f32 1.442695, %v1341_v45 }
 0x89b   :  { %v2835_v61 = vmul.f32 %v2195_v33, %v2037_v47  ;;  %v2197_v37 = vpop.eup %2196 }
 0x89c   :  { %2198 = vpow2.f32 %v1347_v50  ;;  %v2847_v0 = vmul.f32 %v2197_v37, %v2014_v39  ;;  %v1198_v39 = vld [vmem:[#allocation2 + $0x1f8] sm:$0xff] }
 0x89d   :  { %v1358_v54 = vsel %vm85_vm0, %v2835_v61, 0.0  ;;  %2200 = vpow2.f32 %v1103_v27 }
 0x89e   :  { %1359 = vadd.xlane.f32.xlu0 %v1358_v54  ;;  %v1115_v3 = vsel %vm85_vm0, %v2847_v0, 0.0 }
 0x89f   :  { %v2108_v46 = vpop.permute.xlu2 %2107 }
 0x8a0   :  { %v2109_v41 = vunpack.i.l.bf16 %v2108_v46  ;;  %v2110_v32 = vunpack.i.h.bf16 %v2108_v46 }
 0x8a2   :  { %v2199_v30 = vpop.eup %2198  ;;  %v2118_v58 = vpop.permute.xlu0 %2117  ;;  %1427 = vmatpush.msrb.mxu2 %v2109_v41 }
 0x8a3   :  { %v2119_v59 = vunpack.i.l.bf16 %v2118_v58  ;;  %v2842_v29 = vmul.f32 %v2199_v30, %v2038_v57  ;;  %v2201_v63 = vpop.eup %2200  ;;  %v2120_v36 = vunpack.i.h.bf16 %v2118_v58 }
 0x8a4   :  { %1428 = vmatpush.msrb.mxu2 %v2110_v32  ;;  %v2856_v62 = vmul.f32 %v2201_v63, %v2015_v51  ;;  %v1445_v63 = vld [vmem:[#allocation2 + $0x210] sm:$0xff] }
 0x8a5   :  { %v1361_v1 = vsel %vm85_vm0, %v2842_v29, 0.0 }
 0x8a6   :  { %1429 = vmatpush.msrb.mxu2 %v2119_v59  ;;  %1362 = vadd.xlane.f32.xlu0 %v1361_v1  ;;  %v1118_v5 = vsel %vm85_vm0, %v2856_v62, 0.0  ;;  %v1199_v59 = vld [vmem:[#allocation2 + $0x200] sm:$0xff] }
 0x8a7   :  { %1226 = vmatpush.msrb.mxu1 %v1199_v59 }
 0x8a8   :  { %1430 = vmatpush.msrb.mxu2 %v2120_v36 }
 0x8a9   :  { %1116 = vadd.xlane.f32.xlu1 %v1115_v3  ;;  %1227 = vmatpush.msrb.mxu1 %v1198_v39 }
 0x8ae   :  { %1119 = vadd.xlane.f32.xlu0 %v1118_v5  ;;  %v2113_v4 = vpop.permute.xlu1 %2112 }
 0x8af   :  { %v2114_v8 = vunpack.i.l.bf16 %v2113_v4  ;;  %v2115_v15 = vunpack.i.h.bf16 %v2113_v4 }
 0x8b1   :  { %1181 = vmatpush.msrb.mxu0 %v2114_v8 }
 0x8b3   :  { %1182 = vmatpush.msrb.mxu0 %v2115_v15 }
 0x8d8   :  { %v1114_v21 = vpop.xlane.xlu2 %1113 }
 0x8d9   :  { %v1338_v11 = vpop.xlane.xlu1 %1337  ;;  %vm1122_vm9 = vcmp.eq.f32.partialorder %v1114_v21, 0.0 }
 0x8da   :  { %v1342_v9 = vsub.f32 %v2816_v52, %v1338_v11  ;;  %v2017_v52 = vsel %vm1122_vm9, 1.0, %v2287_v48 }
 0x8db   :  { %v1134_v34 = vadd.f32 %v2017_v52, %v1114_v21 }
 0x8dc   :  { %v1349_v10 = vmul.f32 1.442695, %v1342_v9 }
 0x8de   :  { %2202 = vpow2.f32 %v1349_v10 }
 0x8df   :  { %2204 = vrcp.f32 %v1133_v25 }
 0x8e0   :  { %2206 = vrcp.f32 %v1134_v34 }
 0x8e4   :  { %v2203_v55 = vpop.eup %2202 }
 0x8e5   :  { %v2865_v28 = vmul.f32 %v2203_v55, %v2039_v19  ;;  %v2205_v38 = vpop.eup %2204 }
 0x8e6   :  { %v1141_v12 = vmul.f32 %v2205_v38, %v2787_v56  ;;  %v2207_v35 = vpop.eup %2206 }
 0x8e7   :  { %v1364_v22 = vsel %vm85_vm0, %v2865_v28, 0.0  ;;  %v1142_v14 = vmul.f32 %v2207_v35, %v2812_v17 }
 0x8e8   :  { %1365 = vadd.xlane.f32.xlu2 %v1364_v22 }
 0x8f1   :  { %v1357_v16 = vpop.xlane.xlu0 %1356  ;;  %v2123_v26 = vpop.permute.xlu1 %2122 }
 0x8f2   :  { %vm1367_vm14 = vcmp.eq.f32.partialorder %v1357_v16, 0.0  ;;  %v2124_v60 = vunpack.i.l.bf16 %v2123_v26  ;;  %v2125_v31 = vunpack.i.h.bf16 %v2123_v26 }
 0x8f3   :  { %v2040_v24 = vsel %vm1367_vm14, 1.0, %v2287_v48 }
 0x8f4   :  { %v1379_v23 = vadd.f32 %v2040_v24, %v1357_v16  ;;  %1183 = vmatpush.msrb.mxu0 %v2124_v60 }
 0x8f6   :  { %2208 = vrcp.f32 %v1379_v23  ;;  %1184 = vmatpush.msrb.mxu0 %v2125_v31 }
 0x8f7   :  { %2020 = vmatmul.msk.f32.vlgmr.msrb.gmra.mxu0 %vm85_vm0, %v1141_v12 }
 0x8f8   :  { %1472 = vmatpush.msra.mxu0 %v1445_v63 }
 0x8fc   :  { %v2209_v42 = vpop.eup %2208 }
 0x8fd   :  { %v1387_v43 = vmul.f32 %v2209_v42, %v2825_v6 }
 0x8ff   :  { %2021 = vmatmul.msk.f32.gmra.mxu0 %vm85_vm0, %v1142_v14  ;;  %2044 = vmatmul.msk.f32.vlgmr.msrb.gmra.mxu2 %vm85_vm0, %v1387_v43 }
 0x911   :  { %v1360_v13 = vpop.xlane.xlu0 %1359 }
 0x912   :  { %vm1368_vm3 = vcmp.eq.f32.partialorder %v1360_v13, 0.0 }
 0x913   :  { %v2041_v20 = vsel %vm1368_vm3, 1.0, %v2287_v48 }
 0x914   :  { %v1380_v44 = vadd.f32 %v2041_v20, %v1360_v13 }
 0x916   :  { %2210 = vrcp.f32 %v1380_v44 }
 0x919   :  { %v1363_v56 = vpop.xlane.xlu0 %1362 }
 0x91a   :  { %vm1369_vm4 = vcmp.eq.f32.partialorder %v1363_v56, 0.0 }
 0x91b   :  { %v2042_v45 = vsel %vm1369_vm4, 1.0, %v2287_v48 }
 0x91c   :  { %v2211_v33 = vpop.eup %2210  ;;  %v1381_v50 = vadd.f32 %v2042_v45, %v1363_v56  ;;  %v1117_v47 = vpop.xlane.xlu1 %1116 }
 0x91d   :  { %vm1123_vm7 = vcmp.eq.f32.partialorder %v1117_v47, 0.0  ;;  %v1388_v17 = vmul.f32 %v2211_v33, %v2835_v61 }
 0x91e   :  { %2212 = vrcp.f32 %v1381_v50  ;;  %v2018_v6 = vsel %vm1123_vm7, 1.0, %v2287_v48 }
 0x91f   :  { %v1135_v27 = vadd.f32 %v2018_v6, %v1117_v47  ;;  %2045 = vmatmul.msk.f32.gmra.mxu2 %vm85_vm0, %v1388_v17 }
 0x921   :  { %2214 = vrcp.f32 %v1135_v27  ;;  %v1120_v54 = vpop.xlane.xlu0 %1119 }
 0x922   :  { %vm1124_vm10 = vcmp.eq.f32.partialorder %v1120_v54, 0.0 }
 0x923   :  { %v2019_v46 = vsel %vm1124_vm10, 1.0, %v2287_v48 }
 0x924   :  { %v2213_v41 = vpop.eup %2212  ;;  %v1136_v37 = vadd.f32 %v2019_v46, %v1120_v54 }
 0x925   :  { %v1389_v30 = vmul.f32 %v2213_v41, %v2842_v29  ;;  %v1553_v41 = vld [vmem:[#allocation2 + $0x238] sm:$0xff] }
 0x926   :  { %2216 = vrcp.f32 %v1136_v37  ;;  %1580 = vmatpush.msra.mxu1 %v1553_v41  ;;  %v1552_v37 = vld [vmem:[#allocation2 + $0x230] sm:$0xff] }
 0x927   :  { %v2215_v32 = vpop.eup %2214  ;;  %2046 = vmatmul.msk.f32.gmra.mxu2 %vm85_vm0, %v1389_v30  ;;  %v1550_v30 = vld [vmem:[#allocation2 + $0x220] sm:$0xff] }
 0x928   :  { %v1143_v61 = vmul.f32 %v2215_v32, %v2847_v0  ;;  %v1444_v0 = vld [vmem:[#allocation2 + $0x208] sm:$0xff]  ;;  %1581 = vmatpush.msra.mxu1 %v1552_v37 }
 0x929   :  { %1473 = vmatpush.msra.mxu0 %v1444_v0 }
 0x92a   :  { %2022 = vmatmul.msk.f32.gmra.mxu0 %vm85_vm0, %v1143_v61 }
 0x92c   :  { %v2217_v58 = vpop.eup %2216 }
 0x92d   :  { %v1144_v57 = vmul.f32 %v2217_v58, %v2856_v62 }
 0x932   :  { %2023 = vmatmul.msk.f32.gmra.mxu0 %vm85_vm0, %v1144_v57 }
 0x95b   :  { %v1366_v1 = vpop.xlane.xlu2 %1365 }
 0x95c   :  { %vm1370_vm15 = vcmp.eq.f32.partialorder %v1366_v1, 0.0 }
 0x95d   :  { %v2043_v29 = vsel %vm1370_vm15, 1.0, %v2287_v48 }
 0x95e   :  { %v1382_v2 = vadd.f32 %v2043_v29, %v1366_v1 }
 0x960   :  { %2218 = vrcp.f32 %v1382_v2 }
 0x966   :  { %v2219_v36 = vpop.eup %2218 }
 0x967   :  { %v1390_v3 = vmul.f32 %v2219_v36, %v2865_v28  ;;  %v2132_v28 = vld [vmem:[#allocation2 + $0x218] ss:$0 sm:$0xff] }
 0x969   :  { %2047 = vmatmul.msk.f32.gmra.mxu2 %vm85_vm0, %v1390_v3 }
 0x974   :  { %v1186_v51 = vpop.f32.mrf.mxu0 }
 0x975   :  { %2024 = vmatmul.msk.f32.vlgmr.msrb.gmra.mxu1 %vm175_vm1, %v1186_v51 }
 0x97c   :  { %v1189_v62 = vpop.f32.mrf.mxu0 }
 0x97d   :  { %2025 = vmatmul.msk.f32.gmra.mxu1 %vm175_vm1, %v1189_v62 }
 0x982   :  { %v1432_v5 = vpop.f32.mrf.mxu2 }
 0x983   :  { %2048 = vmatmul.msk.f32.vlgmr.msra.gmra.mxu0 %vm175_vm1, %v1432_v5  ;;  %v1495_v5 = vld [vmem:[#allocation2 + $0x290] sm:$0xff] }
 0x9a2   :  { %v1435_v48 = vpop.f32.mrf.mxu2 }
 0x9a3   :  { %2049 = vmatmul.msk.f32.gmra.mxu0 %vm175_vm1, %v1435_v48 }
 0x9a7   :  { %v1192_v4 = vpop.f32.mrf.mxu0 }
 0x9a8   :  { %2026 = vmatmul.msk.f32.gmra.mxu1 %vm175_vm1, %v1192_v4  ;;  %v1496_v4 = vld [vmem:[#allocation2 + $0x298] sm:$0xff] }
 0x9aa   :  { %v1438_v8 = vpop.f32.mrf.mxu2 }
 0x9ab   :  { %2050 = vmatmul.msk.f32.gmra.mxu0 %vm175_vm1, %v1438_v8 }
 0x9af   :  { %v1195_v15 = vpop.f32.mrf.mxu0 }
 0x9b0   :  { %2027 = vmatmul.msk.f32.gmra.mxu1 %vm175_vm1, %v1195_v15 }
 0x9ec   :  { %v1441_v11 = vpop.f32.mrf.mxu2 }
 0x9ed   :  { %2051 = vmatmul.msk.f32.gmra.mxu0 %vm175_vm1, %v1441_v11 }
 0x9f2   :  { %v1229_v9 = vpop.f32.mrf.mxu1 }
 0x9f3   :  { %v1242_v52 = vadd.f32 %v2132_v28, %v1229_v9 }
 0x9fa   :  { %v1232_v55 = vpop.f32.mrf.mxu1 }
 0x9fb   :  { %v1243_v21 = vadd.f32 %v2132_v28, %v1232_v55 }
 0xa00   :  { %v1475_v10 = vpop.f32.mrf.mxu0 }
 0xa01   :  { %v1487_v16 = vadd.f32 %v1475_v10, %v1242_v52 }
 0xa03   :  { %v1491_v60 = vadd.f32 %v1487_v16, %v2689_v49  ;;  %v1684_v16 = vld [vmem:[#allocation2 + $0x280] sm:$0xff] }
 0xa04   :  { %1707 = vmatpush.msra.mxu3 %v1684_v16 }
 0xa05   :  { %v1506_v12 = vmul.f32 %v1491_v60, %v1491_v60  ;;  %v1497_v20 = vsel %vm85_vm0, %v1491_v60, 0.0 }
 0xa07   :  { %v1510_v56 = vsel %vm85_vm0, %v1506_v12, 0.0  ;;  %v1678_v12 = vld [vmem:[#allocation2 + $0x250] sm:$0xff] }
 0xa20   :  { %v1478_v19 = vpop.f32.mrf.mxu0 }
 0xa21   :  { %v1488_v34 = vadd.f32 %v1478_v19, %v1243_v21 }
 0xa23   :  { %v1492_v38 = vadd.f32 %v1488_v34, %v2697_v7 }
 0xa25   :  { %v1235_v53 = vpop.f32.mrf.mxu1  ;;  %v1507_v31 = vmul.f32 %v1492_v38, %v1492_v38  ;;  %v1498_v42 = vsel %vm85_vm0, %v1492_v38, 0.0 }
 0xa26   :  { %v1244_v22 = vadd.f32 %v2132_v28, %v1235_v53 }
 0xa27   :  { %v1511_v49 = vsel %vm85_vm0, %v1507_v31, 0.0  ;;  %v2133_v31 = vld [vmem:[#allocation2 + $0x240] ss:$0 sm:$0xff] }
 0xa28   :  { %v1481_v25 = vpop.f32.mrf.mxu0  ;;  %v1512_v50 = vadd.f32 %v1511_v49, %v1510_v56 }
 0xa29   :  { %v1489_v26 = vadd.f32 %v1481_v25, %v1244_v22 }
 0xa2b   :  { %v2903_v24 = vadd.f32 %v1489_v26, %v2704_v18  ;;  %v1499_v18 = vadd.f32 %v1498_v42, %v1497_v20  ;;  %v1683_v26 = vld [vmem:[#allocation2 + $0x278] sm:$0xff]  ;;  %v1677_v42 = vld [vmem:[#allocation2 + $0x248] sm:$0xff] }
 0xa2c   :  { %1708 = vmatpush.msra.mxu3 %v1683_v26 }
 0xa2d   :  { %v1238_v23 = vpop.f32.mrf.mxu1  ;;  %v1508_v43 = vmul.f32 %v2903_v24, %v2903_v24  ;;  %v1500_v7 = vsel %vm85_vm0, %v2903_v24, 0.0 }
 0xa2e   :  { %v1245_v35 = vadd.f32 %v2132_v28, %v1238_v23  ;;  %v1501_v33 = vadd.f32 %v1500_v7, %v1499_v18  ;;  %v1679_v23 = vld [vmem:[#allocation2 + $0x258] sm:$0xff] }
 0xa2f   :  { %v1513_v45 = vsel %vm85_vm0, %v1508_v43, 0.0 }
 0xa30   :  { %v1514_v27 = vadd.f32 %v1513_v45, %v1512_v50 }
 0xa6a   :  { %v1484_v14 = vpop.f32.mrf.mxu0 }
 0xa6b   :  { %v1490_v13 = vadd.f32 %v1484_v14, %v1245_v35 }
 0xa6d   :  { %v1494_v44 = vadd.f32 %v1490_v13, %v2708_v40  ;;  %v1551_v40 = vld [vmem:[#allocation2 + $0x228] sm:$0xff] }
 0xa6e   :  { %1582 = vmatpush.msra.mxu1 %v1551_v40 }
 0xa6f   :  { %v1502_v47 = vsel %vm85_vm0, %v1494_v44, 0.0  ;;  %v1509_v17 = vmul.f32 %v1494_v44, %v1494_v44 }
 0xa70   :  { %v1503_v6 = vadd.f32 %v1502_v47, %v1501_v33  ;;  %1583 = vmatpush.msra.mxu1 %v1550_v30 }
 0xa71   :  { %v1515_v54 = vsel %vm85_vm0, %v1509_v17, 0.0 }
 0xa72   :  { %1504 = vadd.xlane.f32.xlu2 %v1503_v6  ;;  %v1516_v46 = vadd.f32 %v1515_v54, %v1514_v27 }
 0xa74   :  { %1517 = vadd.xlane.f32.xlu1 %v1516_v46 }
 0xae5   :  { %v1505_v32 = vpop.xlane.xlu2 %1504 }
 0xae6   :  { %v1519_v61 = vmul.f32 0.0078125, %v1505_v32 }
 0xae7   :  { %v1518_v58 = vpop.xlane.xlu1 %1517 }
 0xae8   :  { %v1520_v57 = vmul.f32 0.0078125, %v1518_v58  ;;  %v1521_v59 = vmul.f32 %v1519_v61, %v1519_v61  ;;  %v1523_v51 = vsub.f32 %v1491_v60, %v1519_v61  ;;  %v1524_v15 = vsub.f32 %v1492_v38, %v1519_v61  ;;  %v1682_v38 = vld [vmem:[#allocation2 + $0x270] sm:$0xff]  ;;  %v1681_v60 = vld [vmem:[#allocation2 + $0x268] sm:$0xff] }
 0xae9   :  { %v1525_v55 = vsub.f32 %v2903_v24, %v1519_v61  ;;  %v1526_v21 = vsub.f32 %v1494_v44, %v1519_v61  ;;  %1709 = vmatpush.msra.mxu3 %v1682_v38  ;;  %v1680_v24 = vld [vmem:[#allocation2 + $0x260] sm:$0xff] }
 0xaea   :  { %v1522_v39 = vsub.f32 %v1520_v57, %v1521_v59 }
 0xaeb   :  { %1710 = vmatpush.msra.mxu3 %v1681_v60 }
 0xaec   :  { %v1527_v1 = vadd.f32 1e-05, %v1522_v39 }
 0xaed   :  { %1711 = vmatpush.msra.mxu3 %v1680_v24 }
 0xaee   :  { %2220 = vrsqrt.f32 %v1527_v1  ;;  %vm1534_vm12 = vweird.f32 %v1527_v1 }
 0xaef   :  { %1712 = vmatpush.msra.mxu3 %v1679_v23 }
 0xaf1   :  { %1713 = vmatpush.msra.mxu3 %v1678_v12 }
 0xaf3   :  { %1714 = vmatpush.msra.mxu3 %v1677_v42 }
 0xaf4   :  { %v2221_v29 = vpop.eup %2220 }
 0xaf5   :  { %v1529_v63 = vmul.f32 %v2221_v29, %v1527_v1  ;;  %vm1535_vm1 = vweird.f32 %v2221_v29 }
 0xaf6   :  { %vm1536_vm2 = vmor %vm1534_vm12, %vm1535_vm1 }
 0xaf7   :  { %v1530_v2 = vmul.f32 %v2221_v29, %v1529_v63 }
 0xaf9   :  { %v1531_v0 = vmul.f32 0.5, %v1530_v2 }
 0xafb   :  { %v1532_v36 = vsub.f32 1.5, %v1531_v0 }
 0xafd   :  { %v1533_v3 = vmul.f32 %v2221_v29, %v1532_v36 }
 0xaff   :  { %v1537_v62 = vsel %vm1536_vm2, %v2221_v29, %v1533_v3 }
 0xb00   :  { %v1538_v48 = vmul.f32 %v1537_v62, %v1523_v51  ;;  %v1539_v9 = vmul.f32 %v1537_v62, %v1524_v15  ;;  %v1540_v53 = vmul.f32 %v1537_v62, %v1525_v55  ;;  %v1541_v25 = vmul.f32 %v1537_v62, %v1526_v21 }
 0xb02   :  { %v1542_v8 = vmul.f32 %v1538_v48, %v1495_v5  ;;  %v1543_v10 = vmul.f32 %v1539_v9, %v1495_v5  ;;  %v1544_v28 = vmul.f32 %v1540_v53, %v1495_v5  ;;  %v1545_v52 = vmul.f32 %v1541_v25, %v1495_v5 }
 0xb04   :  { %v2917_v11 = vadd.f32 %v1542_v8, %v1496_v4  ;;  %v2922_v19 = vadd.f32 %v1543_v10, %v1496_v4  ;;  %v2926_v22 = vadd.f32 %v1544_v28, %v1496_v4  ;;  %v2930_v34 = vadd.f32 %v1545_v52, %v1496_v4 }
 0xb06   :  { %2052 = vmatmul.msk.f32.vlgmr.msra.gmra.mxu1 %vm85_vm0, %v2917_v11 }
 0xb0e   :  { %2053 = vmatmul.msk.f32.gmra.mxu1 %vm85_vm0, %v2922_v19 }
 0xb16   :  { %2054 = vmatmul.msk.f32.gmra.mxu1 %vm85_vm0, %v2926_v22 }
 0xb1e   :  { %2055 = vmatmul.msk.f32.gmra.mxu1 %vm85_vm0, %v2930_v34 }
 0xb83   :  { %v1585_v35 = vpop.f32.mrf.mxu1 }
 0xb84   :  { %v1586_v43 = vadd.f32 %v2133_v31, %v1585_v35 }
 0xb86   :  { %v2056_v14 = vmul.f32 -1.442695, %v1586_v43 }
 0xb88   :  { %2222 = vpow2.f32 %v2056_v14 }
 0xb8b   :  { %v1588_v13 = vpop.f32.mrf.mxu1 }
 0xb8c   :  { %v1589_v20 = vadd.f32 %v2133_v31, %v1588_v13 }
 0xb8e   :  { %v2223_v7 = vpop.eup %2222  ;;  %v2057_v49 = vmul.f32 -1.442695, %v1589_v20 }
 0xb8f   :  { %v1609_v18 = vadd.f32 1.0, %v2223_v7 }
 0xb90   :  { %2224 = vpow2.f32 %v2057_v49  ;;  %v2134_v49 = vld [vmem:[#allocation2 + $0x288] ss:$0 sm:$0xff] }
 0xb91   :  { %2226 = vrcp.f32 %v1609_v18  ;;  %v1624_v27 = vand.u32 2147483648, %v1609_v18  ;;  %v1622_v41 = vand.u32 2147483647, %v1609_v18  ;;  %vm1618_vm8 = vweird.f32 %v1609_v18 }
 0xb93   :  { %v1591_v44 = vpop.f32.mrf.mxu1  ;;  %v1625_v58 = vor.u32 1.1754944e-38, %v1624_v27  ;;  %vm1623_vm11 = vcmp.eq.f32.partialorder %v1622_v41, 8.507059e+37 }
 0xb94   :  { %v2934_v56 = vadd.f32 %v2133_v31, %v1591_v44 }
 0xb96   :  { %v2225_v45 = vpop.eup %2224  ;;  %v2058_v33 = vmul.f32 -1.442695, %v2934_v56 }
 0xb97   :  { %v2227_v50 = vpop.eup %2226  ;;  %v1610_v47 = vadd.f32 1.0, %v2225_v45 }
 0xb98   :  { %v1614_v17 = vmul.f32 %v2227_v50, %v1609_v18  ;;  %2228 = vpow2.f32 %v2058_v33  ;;  %vm1619_vm5 = vweird.f32 %v2227_v50 }
 0xb99   :  { %2230 = vrcp.f32 %v1610_v47  ;;  %vm1620_vm13 = vmor %vm1618_vm8, %vm1619_vm5  ;;  %v1639_v2 = vand.u32 2147483648, %v1610_v47  ;;  %v1637_v36 = vand.u32 2147483647, %v1610_v47  ;;  %vm1633_vm14 = vweird.f32 %v1610_v47 }
 0xb9a   :  { %v1615_v6 = vsub.f32 1.0, %v1614_v17 }
 0xb9b   :  { %v1594_v54 = vpop.f32.mrf.mxu1  ;;  %v1640_v5 = vor.u32 1.1754944e-38, %v1639_v2  ;;  %vm1638_vm4 = vcmp.eq.f32.partialorder %v1637_v36, 8.507059e+37  ;;  %v1790_v2 = vld [vmem:[#allocation2 + $0xc0] sm:$0xff]  ;;  %v1787_v36 = vld [vmem:[#allocation2 + $0xa8] sm:$0xff] }
 0xb9c   :  { %v1616_v46 = vmul.f32 %v2227_v50, %v1615_v6  ;;  %v2937_v37 = vadd.f32 %v2133_v31, %v1594_v54  ;;  %1817 = vmatpush.msra.mxu2 %v1790_v2 }
 0xb9e   :  { %v2229_v40 = vpop.eup %2228  ;;  %v1617_v30 = vadd.f32 %v2227_v50, %v1616_v46  ;;  %v2059_v32 = vmul.f32 -1.442695, %v2937_v37 }
 0xb9f   :  { %v2231_v61 = vpop.eup %2230  ;;  %v1611_v57 = vadd.f32 1.0, %v2229_v40 }
 0xba0   :  { %v1621_v59 = vsel %vm1620_vm13, %v2227_v50, %v1617_v30  ;;  %v1629_v39 = vmul.f32 %v2231_v61, %v1610_v47  ;;  %2232 = vpow2.f32 %v2059_v32  ;;  %vm1634_vm9 = vweird.f32 %v2231_v61 }
 0xba1   :  { %v1626_v1 = vsel %vm1623_vm11, %v1625_v58, %v1621_v59  ;;  %2234 = vrcp.f32 %v1611_v57  ;;  %vm1635_vm3 = vmor %vm1633_vm14, %vm1634_vm9  ;;  %v1654_v55 = vand.u32 2147483648, %v1611_v57  ;;  %v1652_v28 = vand.u32 2147483647, %v1611_v57 }
 0xba2   :  { %v1673_v29 = vmul.f32 %v1626_v1, %v1586_v43  ;;  %v1630_v63 = vsub.f32 1.0, %v1629_v39  ;;  %vm1648_vm10 = vweird.f32 %v1611_v57 }
 0xba3   :  { %v1655_v52 = vor.u32 1.1754944e-38, %v1654_v55  ;;  %vm1653_vm1 = vcmp.eq.f32.partialorder %v1652_v28, 8.507059e+37 }
 0xba4   :  { %v1631_v0 = vmul.f32 %v2231_v61, %v1630_v63  ;;  %2060 = vmatmul.msk.f32.vlgmr.msra.gmra.mxu3 %vm855_vm6, %v1673_v29 }
 0xba6   :  { %v2233_v3 = vpop.eup %2232  ;;  %v1632_v51 = vadd.f32 %v2231_v61, %v1631_v0  ;;  %v1789_v0 = vld [vmem:[#allocation2 + $0xb8] sm:$0xff] }
 0xba7   :  { %v2235_v62 = vpop.eup %2234  ;;  %v1612_v48 = vadd.f32 1.0, %v2233_v3  ;;  %1818 = vmatpush.msra.mxu2 %v1789_v0 }
 0xba8   :  { %v1636_v4 = vsel %vm1635_vm3, %v2231_v61, %v1632_v51  ;;  %v1644_v8 = vmul.f32 %v2235_v62, %v1611_v57  ;;  %vm1649_vm7 = vweird.f32 %v2235_v62 }
 0xba9   :  { %v1641_v15 = vsel %vm1638_vm4, %v1640_v5, %v1636_v4  ;;  %2236 = vrcp.f32 %v1612_v48  ;;  %vm1650_vm15 = vmor %vm1648_vm10, %vm1649_vm7  ;;  %v1669_v23 = vand.u32 2147483648, %v1612_v48  ;;  %v1667_v12 = vand.u32 2147483647, %v1612_v48 }
 0xbaa   :  { %v1674_v9 = vmul.f32 %v1641_v15, %v1589_v20  ;;  %v1645_v10 = vsub.f32 1.0, %v1644_v8  ;;  %vm1663_vm2 = vweird.f32 %v1612_v48  ;;  %vm1922_vm4 = vcmask 7168  }
 0xbab   :  { %v1670_v42 = vor.u32 1.1754944e-38, %v1669_v23  ;;  %vm1668_vm8 = vcmp.eq.f32.partialorder %v1667_v12, 8.507059e+37 }
 0xbac   :  { %v1646_v53 = vmul.f32 %v2235_v62, %v1645_v10  ;;  %2061 = vmatmul.msk.f32.gmra.mxu3 %vm855_vm6, %v1674_v9 }
 0xbae   :  { %v1647_v21 = vadd.f32 %v2235_v62, %v1646_v53 }
 0xbaf   :  { %v2237_v25 = vpop.eup %2236 }
 0xbb0   :  { %v1651_v16 = vsel %vm1650_vm15, %v2235_v62, %v1647_v21  ;;  %v1659_v26 = vmul.f32 %v2237_v25, %v1612_v48  ;;  %vm1664_vm12 = vweird.f32 %v2237_v25 }
 0xbb1   :  { %v1656_v38 = vsel %vm1653_vm1, %v1655_v52, %v1651_v16  ;;  %vm1665_vm5 = vmor %vm1663_vm2, %vm1664_vm12  ;;  %v1732_v52 = vld [vmem:[#allocation2 + $0x2a0] sm:$0xff] }
 0xbb2   :  { %v1675_v60 = vmul.f32 %v1656_v38, %v2934_v56  ;;  %v1660_v24 = vsub.f32 1.0, %v1659_v26  ;;  %v1733_v26 = vld [vmem:[#allocation2 + $0x2a8] sm:$0xff] }
 0xbb4   :  { %v1661_v31 = vmul.f32 %v2237_v25, %v1660_v24  ;;  %2062 = vmatmul.msk.f32.gmra.mxu3 %vm855_vm6, %v1675_v60 }
 0xbb6   :  { %v1662_v35 = vadd.f32 %v2237_v25, %v1661_v31 }
 0xbb8   :  { %v1666_v43 = vsel %vm1665_vm5, %v2237_v25, %v1662_v35 }
 0xbb9   :  { %v1671_v14 = vsel %vm1668_vm8, %v1670_v42, %v1666_v43 }
 0xbba   :  { %v1676_v13 = vmul.f32 %v1671_v14, %v2937_v37 }
 0xbbc   :  { %2063 = vmatmul.msk.f32.gmra.mxu3 %vm855_vm6, %v1676_v13 }
 0xc27   :  { %v1716_v20 = vpop.f32.mrf.mxu3 }
 0xc28   :  { %v1717_v44 = vadd.f32 %v2134_v49, %v1716_v20 }
 0xc2a   :  { %v1728_v50 = vadd.f32 %v1717_v44, %v2917_v11 }
 0xc2c   :  { %v1743_v6 = vmul.f32 %v1728_v50, %v1728_v50  ;;  %v1734_v37 = vsel %vm85_vm0, %v1728_v50, 0.0 }
 0xc2e   :  { %v1747_v30 = vsel %vm85_vm0, %v1743_v6, 0.0 }
 0xc2f   :  { %v1719_v7 = vpop.f32.mrf.mxu3 }
 0xc30   :  { %v1720_v18 = vadd.f32 %v2134_v49, %v1719_v7 }
 0xc32   :  { %v1729_v45 = vadd.f32 %v1720_v18, %v2922_v19  ;;  %v2135_v18 = vld [vmem:[#allocation2 + $0xc8] ss:$0 sm:$0xff] }
 0xc34   :  { %v1744_v17 = vmul.f32 %v1729_v45, %v1729_v45  ;;  %v1735_v27 = vsel %vm85_vm0, %v1729_v45, 0.0 }
 0xc35   :  { %v1736_v11 = vadd.f32 %v1735_v27, %v1734_v37 }
 0xc36   :  { %v1748_v40 = vsel %vm85_vm0, %v1744_v17, 0.0 }
 0xc37   :  { %v1722_v56 = vpop.f32.mrf.mxu3  ;;  %v1749_v58 = vadd.f32 %v1748_v40, %v1747_v30 }
 0xc38   :  { %v1723_v33 = vadd.f32 %v2134_v49, %v1722_v56 }
 0xc3a   :  { %v2949_v47 = vadd.f32 %v1723_v33, %v2926_v22 }
 0xc3c   :  { %v1745_v54 = vmul.f32 %v2949_v47, %v2949_v47  ;;  %v1737_v19 = vsel %vm85_vm0, %v2949_v47, 0.0 }
 0xc3d   :  { %v1738_v61 = vadd.f32 %v1737_v19, %v1736_v11 }
 0xc3e   :  { %v1750_v32 = vsel %vm85_vm0, %v1745_v54, 0.0 }
 0xc3f   :  { %v1725_v46 = vpop.f32.mrf.mxu3  ;;  %v1751_v1 = vadd.f32 %v1750_v32, %v1749_v58  ;;  %v1834_v32 = vld [vmem:[#allocation2 + $0xd0] sm:$0xff] }
 0xc40   :  { %v1726_v41 = vadd.f32 %v2134_v49, %v1725_v46  ;;  %vm1838_vm14 = vcmp.gt.f32.partialorder %v1834_v32, 0.5 }
 0xc42   :  { %v1731_v22 = vadd.f32 %v1726_v41, %v2930_v34  ;;  %v1788_v34 = vld [vmem:[#allocation2 + $0xb0] sm:$0xff] }
 0xc43   :  { %1819 = vmatpush.msra.mxu2 %v1788_v34 }
 0xc44   :  { %v1739_v57 = vsel %vm85_vm0, %v1731_v22, 0.0  ;;  %v1746_v59 = vmul.f32 %v1731_v22, %v1731_v22 }
 0xc45   :  { %v1740_v39 = vadd.f32 %v1739_v57, %v1738_v61  ;;  %1820 = vmatpush.msra.mxu2 %v1787_v36 }
 0xc46   :  { %v1752_v29 = vsel %vm85_vm0, %v1746_v59, 0.0 }
 0xc47   :  { %1741 = vadd.xlane.f32.xlu0 %v1740_v39  ;;  %v1753_v63 = vadd.f32 %v1752_v29, %v1751_v1 }
 0xc49   :  { %1754 = vadd.xlane.f32.xlu2 %v1753_v63 }
 0xcba   :  { %v1742_v3 = vpop.xlane.xlu0 %1741 }
 0xcbb   :  { %v1756_v51 = vmul.f32 0.0078125, %v1742_v3 }
 0xcbc   :  { %v1755_v62 = vpop.xlane.xlu2 %1754 }
 0xcbd   :  { %v1757_v5 = vmul.f32 0.0078125, %v1755_v62  ;;  %v1758_v48 = vmul.f32 %v1756_v51, %v1756_v51  ;;  %v1760_v21 = vsub.f32 %v1728_v50, %v1756_v51  ;;  %v1761_v60 = vsub.f32 %v1729_v45, %v1756_v51 }
 0xcbe   :  { %v1762_v12 = vsub.f32 %v2949_v47, %v1756_v51  ;;  %v1763_v14 = vsub.f32 %v1731_v22, %v1756_v51 }
 0xcbf   :  { %v1759_v4 = vsub.f32 %v1757_v5, %v1758_v48  ;;  %v1835_v5 = vld [vmem:[#allocation2 + $0xd8] sm:$0xff] }
 0xcc0   :  { %vm1839_vm1 = vcmp.gt.f32.partialorder %v1835_v5, 0.5 }
 0xcc1   :  { %v1764_v8 = vadd.f32 1e-05, %v1759_v4 }
 0xcc3   :  { %2238 = vrsqrt.f32 %v1764_v8  ;;  %vm1771_vm13 = vweird.f32 %v1764_v8 }
 0xcc9   :  { %v2239_v15 = vpop.eup %2238 }
 0xcca   :  { %v1766_v9 = vmul.f32 %v2239_v15, %v1764_v8  ;;  %vm1772_vm6 = vweird.f32 %v2239_v15 }
 0xccb   :  { %vm1773_vm11 = vmor %vm1771_vm13, %vm1772_vm6 }
 0xccc   :  { %v1767_v10 = vmul.f32 %v2239_v15, %v1766_v9 }
 0xcce   :  { %v1768_v55 = vmul.f32 0.5, %v1767_v10 }
 0xcd0   :  { %v1769_v53 = vsub.f32 1.5, %v1768_v55 }
 0xcd2   :  { %v1770_v28 = vmul.f32 %v2239_v15, %v1769_v53 }
 0xcd4   :  { %v1774_v25 = vsel %vm1773_vm11, %v2239_v15, %v1770_v28 }
 0xcd5   :  { %v1775_v16 = vmul.f32 %v1774_v25, %v1760_v21  ;;  %v1776_v23 = vmul.f32 %v1774_v25, %v1761_v60  ;;  %v1777_v42 = vmul.f32 %v1774_v25, %v1762_v12  ;;  %v1778_v20 = vmul.f32 %v1774_v25, %v1763_v14 }
 0xcd7   :  { %v1779_v38 = vmul.f32 %v1775_v16, %v1732_v52  ;;  %v1780_v31 = vmul.f32 %v1776_v23, %v1732_v52  ;;  %v1781_v43 = vmul.f32 %v1777_v42, %v1732_v52  ;;  %v1782_v7 = vmul.f32 %v1778_v20, %v1732_v52  ;;  %v1837_v20 = vld [vmem:[#allocation2 + $0xe8] sm:$0xff] }
 0xcd9   :  { %v1783_v24 = vadd.f32 %v1779_v38, %v1733_v26  ;;  %v1784_v35 = vadd.f32 %v1780_v31, %v1733_v26  ;;  %v1785_v13 = vadd.f32 %v1781_v43, %v1733_v26  ;;  %v1786_v49 = vadd.f32 %v1782_v7, %v1733_v26  ;;  %v1836_v26 = vld [vmem:[#allocation2 + $0xe0] sm:$0xff] }
 0xcda   :  { %vm1840_vm6 = vcmp.gt.f32.partialorder %v1836_v26, 0.5 }
 0xcdb   :  { %2064 = vmatmul.msk.f32.vlgmr.msra.gmra.mxu2 %vm85_vm0, %v1783_v24 }
 0xce3   :  { %2065 = vmatmul.msk.f32.gmra.mxu2 %vm85_vm0, %v1784_v35 }
 0xceb   :  { %2066 = vmatmul.msk.f32.gmra.mxu2 %vm85_vm0, %v1785_v13 }
 0xcf3   :  { %2067 = vmatmul.msk.f32.gmra.mxu2 %vm85_vm0, %v1786_v49 }
 0xd5e   :  { %v1822_v44 = vpop.f32.mrf.mxu2 }
 0xd5f   :  { %v1823_v56 = vadd.f32 %v2135_v18, %v1822_v44 }
 0xd61   :  { %v2068_v45 = vmul.f32 -1.442695, %v1823_v56 }
 0xd63   :  { %2240 = vpow2.f32 %v2068_v45 }
 0xd66   :  { %v1825_v33 = vpop.f32.mrf.mxu2 }
 0xd67   :  { %v1826_v50 = vadd.f32 %v2135_v18, %v1825_v33 }
 0xd69   :  { %v2241_v47 = vpop.eup %2240  ;;  %v2069_v17 = vmul.f32 -1.442695, %v1826_v50 }
 0xd6a   :  { %v1854_v6 = vadd.f32 1.0, %v2241_v47 }
 0xd6b   :  { %2242 = vpow2.f32 %v2069_v17 }
 0xd6c   :  { %2244 = vrcp.f32 %v1854_v6  ;;  %v1869_v22 = vand.u32 2147483648, %v1854_v6  ;;  %v1867_v58 = vand.u32 2147483647, %v1854_v6  ;;  %vm1863_vm9 = vweird.f32 %v1854_v6 }
 0xd6e   :  { %v1828_v27 = vpop.f32.mrf.mxu2  ;;  %v1870_v63 = vor.u32 1.1754944e-38, %v1869_v22  ;;  %vm1868_vm7 = vcmp.eq.f32.partialorder %v1867_v58, 8.507059e+37 }
 0xd6f   :  { %v2968_v54 = vadd.f32 %v2135_v18, %v1828_v27 }
 0xd71   :  { %v2243_v46 = vpop.eup %2242  ;;  %v2070_v41 = vmul.f32 -1.442695, %v2968_v54 }
 0xd72   :  { %v2245_v37 = vpop.eup %2244  ;;  %v1855_v19 = vadd.f32 1.0, %v2243_v46 }
 0xd73   :  { %v1859_v40 = vmul.f32 %v2245_v37, %v1854_v6  ;;  %2246 = vpow2.f32 %v2070_v41  ;;  %vm1864_vm0 = vweird.f32 %v2245_v37 }
 0xd74   :  { %2248 = vrcp.f32 %v1855_v19  ;;  %vm1865_vm3 = vmor %vm1863_vm9, %vm1864_vm0  ;;  %v1884_v62 = vand.u32 2147483648, %v1855_v19  ;;  %v1882_v4 = vand.u32 2147483647, %v1855_v19  ;;  %vm1878_vm15 = vweird.f32 %v1855_v19 }
 0xd75   :  { %v1860_v11 = vsub.f32 1.0, %v1859_v40 }
 0xd76   :  { %v1831_v30 = vpop.f32.mrf.mxu2  ;;  %v1885_v10 = vor.u32 1.1754944e-38, %v1884_v62  ;;  %vm1883_vm2 = vcmp.eq.f32.partialorder %v1882_v4, 8.507059e+37 }
 0xd77   :  { %v1861_v61 = vmul.f32 %v2245_v37, %v1860_v11  ;;  %v2971_v57 = vadd.f32 %v2135_v18, %v1831_v30 }
 0xd79   :  { %v2247_v59 = vpop.eup %2246  ;;  %v1862_v39 = vadd.f32 %v2245_v37, %v1861_v61  ;;  %v2071_v1 = vmul.f32 -1.442695, %v2971_v57 }
 0xd7a   :  { %v2249_v29 = vpop.eup %2248  ;;  %v1856_v2 = vadd.f32 1.0, %v2247_v59 }
 0xd7b   :  { %v1866_v0 = vsel %vm1865_vm3, %v2245_v37, %v1862_v39  ;;  %v1874_v34 = vmul.f32 %v2249_v29, %v1855_v19  ;;  %2250 = vpow2.f32 %v2071_v1  ;;  %vm1879_vm10 = vweird.f32 %v2249_v29 }
 0xd7c   :  { %v1871_v36 = vsel %vm1868_vm7, %v1870_v63, %v1866_v0  ;;  %2252 = vrcp.f32 %v1856_v2  ;;  %vm1880_vm12 = vmor %vm1878_vm15, %vm1879_vm10  ;;  %v1899_v16 = vand.u32 2147483648, %v1856_v2  ;;  %v1897_v60 = vand.u32 2147483647, %v1856_v2 }
 0xd7d   :  { %v1918_v3 = vsel %vm1838_vm14, %v1871_v36, %v1823_v56  ;;  %v1875_v51 = vsub.f32 1.0, %v1874_v34  ;;  %vm1893_vm8 = vweird.f32 %v1856_v2  ;;  %vm1841_vm14 = vcmp.gt.f32.partialorder %v1837_v20, 0.5 }
 0xd7e   :  { %1923 = vst.msk [vmem:[%s2994_s2] sm:$0xff] %vm1922_vm4, %v1918_v3  ;;  %v1900_v31 = vor.u32 1.1754944e-38, %v1899_v16  ;;  %vm1898_vm11 = vcmp.eq.f32.partialorder %v1897_v60, 8.507059e+37 }
 0xd7f   :  { %v1876_v48 = vmul.f32 %v2249_v29, %v1875_v51 }
 0xd81   :  { %v2251_v8 = vpop.eup %2250  ;;  %v1877_v15 = vadd.f32 %v2249_v29, %v1876_v48 }
 0xd82   :  { %v2253_v9 = vpop.eup %2252  ;;  %v1857_v55 = vadd.f32 1.0, %v2251_v8 }
 0xd83   :  { %v1881_v53 = vsel %vm1880_vm12, %v2249_v29, %v1877_v15  ;;  %v1889_v28 = vmul.f32 %v2253_v9, %v1856_v2  ;;  %vm1894_vm5 = vweird.f32 %v2253_v9 }
 0xd84   :  { %v1886_v21 = vsel %vm1883_vm2, %v1885_v10, %v1881_v53  ;;  %2254 = vrcp.f32 %v1857_v55  ;;  %vm1895_vm13 = vmor %vm1893_vm8, %vm1894_vm5  ;;  %v1914_v13 = vand.u32 2147483648, %v1857_v55  ;;  %v1912_v49 = vand.u32 2147483647, %v1857_v55 }
 0xd85   :  { %v1919_v25 = vsel %vm1839_vm1, %v1886_v21, %v1826_v50  ;;  %v1890_v52 = vsub.f32 1.0, %v1889_v28  ;;  %vm1908_vm9 = vweird.f32 %v1857_v55 }
 0xd86   :  { %1924 = vst.msk [vmem:[%s2994_s2 + $0x8] sm:$0xff] %vm1922_vm4, %v1919_v25  ;;  %v1915_v44 = vor.u32 1.1754944e-38, %v1914_v13  ;;  %vm1913_vm7 = vcmp.eq.f32.partialorder %v1912_v49, 8.507059e+37 }
 0xd87   :  { %v1891_v38 = vmul.f32 %v2253_v9, %v1890_v52 }
 0xd89   :  { %v1892_v24 = vadd.f32 %v2253_v9, %v1891_v38 }
 0xd8a   :  { %v2255_v23 = vpop.eup %2254 }
 0xd8b   :  { %v1896_v12 = vsel %vm1895_vm13, %v2253_v9, %v1892_v24  ;;  %v1904_v35 = vmul.f32 %v2255_v23, %v1857_v55  ;;  %vm1909_vm0 = vweird.f32 %v2255_v23 }
 0xd8c   :  { %v1901_v42 = vsel %vm1898_vm11, %v1900_v31, %v1896_v12  ;;  %vm1910_vm3 = vmor %vm1908_vm9, %vm1909_vm0 }
 0xd8d   :  { %v1920_v43 = vsel %vm1840_vm6, %v1901_v42, %v2968_v54  ;;  %v1905_v14 = vsub.f32 1.0, %v1904_v35 }
 0xd8e   :  { %1925 = vst.msk [vmem:[%s2994_s2 + $0x10] sm:$0xff] %vm1922_vm4, %v1920_v43 }
 0xd8f   :  { %v1906_v7 = vmul.f32 %v2255_v23, %v1905_v14 }
 0xd91   :  { %v1907_v18 = vadd.f32 %v2255_v23, %v1906_v7 }
 0xd93   :  { %v1911_v56 = vsel %vm1910_vm3, %v2255_v23, %v1907_v18 }
 0xd94   :  { %v1916_v45 = vsel %vm1913_vm7, %v1915_v44, %v1911_v56 }
 0xd95   :  { %v1921_v33 = vsel %vm1841_vm14, %v1916_v45, %v2971_v57 }
 0xd96   :  { %1926 = vst.msk [vmem:[%s2994_s2 + $0x18] sm:$0xff] %vm1922_vm4, %v1921_v33 }
 0xd97   :  { %1931 = vsyncpa [#allocation3], 1 }

</bundles_post_ra>
